<compile_context>
chip_gen: v5e
topology: v5e:2x2
jax: 0.10.0
libtpu: 0.0.40
codegen_flags: <defaults>
</compile_context>

<pallas_src>
import numpy as np
import jax
import jax.numpy as jnp
from jax.experimental import pallas as pl
from jax.experimental.pallas import tpu as pltpu

# ----------------------- configuration (mirrors CDT args) --------------------
BATCH = 256                    # batch used in __main__ (wrapper tiles any batch)
INPUT_DIM = 16                 # args['input_dim']
FL_DEPTH = 2                   # feature_learner_args['feature_learning_depth']
NUM_INTERMEDIATE = 8           # feature_learner_args['num_intermediate_variables']
DC_DEPTH = 3                   # args['decision_depth']
OUTPUT_DIM = 4                 # args['output_dim']
NEG_SLOPE = 0.05               # args['tree_LReLU_neg_slope']
BETA_FL = 1.0                  # beta_fl = False -> ones(1)
BETA_DC = 1.0                  # args['beta_dc'] = False -> ones(1)
CLASSIFICATION = True          # args['classification']
BATCH_TILE = 128               # rows per grid step (multiple of 8)

N_FL_INNER = 2 ** FL_DEPTH - 1
N_FL_LEAVES = 2 ** FL_DEPTH
N_DC_INNER = 2 ** DC_DEPTH - 1
N_DC_LEAVES = 2 ** DC_DEPTH

# fused-matmul column offsets (static)
_FEAT = N_FL_LEAVES * NUM_INTERMEDIATE          # 32: all FL-leaf intermediate features
_XFL0, _XFL1 = _FEAT, _FEAT + N_FL_INNER        # FL inner-node logits (linear part)
_DCX = N_FL_LEAVES * N_DC_INNER                 # 28: all DC inner-node logits (block-diag)

# TODO(synk): the source of CDT_fl (feature-learner sub-module) is not provided; its
# forward is mirrored as the same additive soft tree plus a per-leaf linear feature
# construction of shape (B*num_fl_leaves, num_intermediate), as in the reference below.


# ----------------------- glue: routing masks for the soft tree ---------------
def routing_masks(depth):
    """POS/NEG masks (num_inner_nodes, num_leaves) encoding the additive tree:
    leaf_val = 1 + LReLU(logits) @ POS + LReLU(-logits) @ NEG"""
    n_inner, n_leaves = 2 ** depth - 1, 2 ** depth
    pos = np.zeros((n_inner, n_leaves), np.float32)
    neg = np.zeros((n_inner, n_leaves), np.float32)
    for leaf in range(n_leaves):
        for d in range(depth):
            child = leaf >> (depth - 1 - d)          # index within layer d+1
            parent = child >> 1                      # index within layer d
            node = (2 ** d - 1) + parent             # global inner-node index
            if child & 1 == 0:
                pos[node, leaf] = 1.0
            else:
                neg[node, leaf] = 1.0
    return pos, neg


def _lrelu(x):
    return jnp.where(x >= 0, x, NEG_SLOPE * x)


# ----------------------- the fused Pallas kernel ------------------------------
def cdt_kernel(data_ref, fliw_ref, flb_ref, fls_ref, flc_ref,
               dciw_ref, dcb_ref, dcs_ref, dcc_ref,
               gsum_ref, gexp_ref, leafdist_ref, out_ref):
    data = data_ref[...]                                                      # (TB, D_in)

    # one fused matmul: [ all FL-leaf features | FL logits (linear) | FL leafval (linear) ]
    comb = jnp.dot(data, fliw_ref[...], preferred_element_type=jnp.float32)   # (TB, 39)
    feat_all = comb[:, :_FEAT]                                                # (TB, 32)
    x_fl = comb[:, _XFL0:_XFL1] + flb_ref[...]                                # (TB, 3)
    fl_leafval = (comb[:, _XFL1:] + flc_ref[...]
                  + jnp.dot(jnp.abs(x_fl), fls_ref[...],
                            preferred_element_type=jnp.float32))              # (TB, 4)
    fm = jnp.max(fl_leafval, axis=-1, keepdims=True)
    fe = jnp.exp(fl_leafval - fm)                                             # FL softmax numerator
    fsum = jnp.sum(fe, axis=-1, keepdims=True)                                # (TB, 1)

    # decision trees of ALL FL leaves at once (block-diagonal weights, lane-dense slabs)
    comb_dc = jnp.dot(feat_all, dciw_ref[...],
                      preferred_element_type=jnp.float32)                     # (TB, 60)
    x_dc = comb_dc[:, :_DCX] + dcb_ref[...]                                   # (TB, 28)
    dc_leafval = (comb_dc[:, _DCX:] + dcc_ref[...]
                  + jnp.dot(jnp.abs(x_dc), dcs_ref[...],
                            preferred_element_type=jnp.float32))              # (TB, 32)

    # grouped softmax over each FL leaf's N_DC_LEAVES columns; the per-row max is a
    # valid stabilizer (softmax is shift-invariant within every group).
    rmax = jnp.max(dc_leafval, axis=-1, keepdims=True)
    e = jnp.exp(dc_leafval - rmax)                                            # (TB, 32)
    gsum = jnp.dot(e, gsum_ref[...], preferred_element_type=jnp.float32)      # (TB, 4)

    # FL mixing weight + both softmax denominators folded into one EUP reciprocal
    w = fe * pl.reciprocal(fsum * gsum, approx=True)                          # (TB, 4)
    wexp = jnp.dot(w, gexp_ref[...], preferred_element_type=jnp.float32)      # (TB, 32)
    out_ref[...] = jnp.dot(e * wexp, leafdist_ref[...],
                           preferred_element_type=jnp.float32)                # (TB, out)


# ----------------------- parameter packing (glue, runs once) -----------------
def build_kernel_params(raw):
    s = NEG_SLOPE
    fl_pos, fl_neg = routing_masks(FL_DEPTH)
    dc_pos, dc_neg = routing_masks(DC_DEPTH)
    A_fl = (0.5 * (1.0 + s)) * (fl_pos - fl_neg)        # leaf_val = 1 + x@A + |x|@S
    S_fl = (0.5 * (1.0 - s)) * (fl_pos + fl_neg)
    A_dc = (0.5 * (1.0 + s)) * (dc_pos - dc_neg)
    S_dc = (0.5 * (1.0 - s)) * (dc_pos + dc_neg)

    flw = np.asarray(raw["fl_inner_w"])[:, 1:].T * BETA_FL                    # (16, 3)
    flb = np.asarray(raw["fl_inner_w"])[:, :1].T * BETA_FL                    # (1, 3)
    flleaf_flat = np.asarray(raw["fl_leaf_w"]).T                              # (16, 32)
    dcw = np.asarray(raw["dc_inner_w"])[:, 1:].T * BETA_DC                    # (8, 7)
    dcb = np.asarray(raw["dc_inner_w"])[:, :1].T * BETA_DC                    # (1, 7)

    eye_fl = np.eye(N_FL_LEAVES, dtype=np.float32)
    dcw_bd = np.kron(eye_fl, dcw)                                             # (32, 28)
    dcb_bd = np.tile(dcb, (1, N_FL_LEAVES))                                   # (1, 28)
    A_dc_bd = np.kron(eye_fl, A_dc)                                           # (28, 32)
    S_dc_bd = np.kron(eye_fl, S_dc)                                           # (28, 32)

    leaf = np.asarray(raw["dc_leaves"])
    if CLASSIFICATION:  # data-independent -> precomputed outside the kernel
        leaf = np.asarray(jax.nn.softmax(jnp.asarray(leaf), axis=1))

    params = {
        "fl_in_w": np.hstack([flleaf_flat, flw, flw @ A_fl]),                 # (16, 39)
        "fl_b": flb,                                                          # (1, 3)
        "fl_s": S_fl,                                                         # (3, 4)
        "fl_c": 1.0 + flb @ A_fl,                                             # (1, 4)
        "dc_in_w": np.hstack([dcw_bd, dcw_bd @ A_dc_bd]),                     # (32, 60)
        "dc_b": dcb_bd,                                                       # (1, 28)
        "dc_s": S_dc_bd,                                                      # (28, 32)
        "dc_c": 1.0 + dcb_bd @ A_dc_bd,                                       # (1, 32)
        "gsum": np.kron(eye_fl, np.ones((N_DC_LEAVES, 1), np.float32)),       # (32, 4)
        "gexp": np.kron(eye_fl, np.ones((1, N_DC_LEAVES), np.float32)),       # (4, 32)
        "leafdist": np.tile(leaf, (N_FL_LEAVES, 1)),                          # (32, 4)
    }
    return {k: jnp.asarray(v, jnp.float32) for k, v in params.items()}


# ----------------------- wrapper (batch-tiled pallas_call) --------------------
def cdt_forward(data, params, LogProb=False, batch_tile=BATCH_TILE):
    B = data.shape[0]
    if B <= batch_tile:
        TB, Bp = B, B
    else:
        TB = batch_tile
        Bp = ((B + TB - 1) // TB) * TB
    if Bp != B:
        data = jnp.pad(data, ((0, Bp - B), (0, 0)))

    weights = (params["fl_in_w"], params["fl_b"], params["fl_s"], params["fl_c"],
               params["dc_in_w"], params["dc_b"], params["dc_s"], params["dc_c"],
               params["gsum"], params["gexp"], params["leafdist"])

    out = pl.pallas_call(
        cdt_kernel,
        out_shape=jax.ShapeDtypeStruct((Bp, OUTPUT_DIM), jnp.float32),
        grid=(Bp // TB,),
        in_specs=([pl.BlockSpec((TB, INPUT_DIM), lambda i: (i, 0))]
                  + [pl.BlockSpec(w.shape, lambda i: (0, 0)) for w in weights]),
        out_specs=pl.BlockSpec((TB, OUTPUT_DIM), lambda i: (i, 0)),
        compiler_params=pltpu.CompilerParams(
            dimension_semantics=("parallel",)),   # batch axis -> 2 TCs on v7x
    )(data, *weights)

    out = out[:B]
    prediction = output = out
    if LogProb:
        # TODO(synk): a log-softmax formulation would avoid -inf if a probability underflows.
        output = jnp.log(output)
        prediction = jnp.log(prediction)
    return prediction, output, 0


# ----------------------- pure-JAX reference (PyTorch-faithful structure) -----
def _tree_probs_ref(logits, depth):
    B = logits.shape[0]
    pp = jnp.stack([_lrelu(logits), _lrelu(-logits)], axis=2)         # (B, inner, 2)
    mu = jnp.ones((B, 1, 1), jnp.float32)
    begin, end = 0, 1
    for d in range(depth):
        _pp = pp[:, begin:end, :]
        mu = jnp.repeat(mu.reshape(B, -1, 1), 2, axis=2)
        mu = mu + _pp
        begin = end
        end = begin + 2 ** (d + 1)
    return jax.nn.softmax(mu.reshape(B, 2 ** depth), axis=1)


def cdt_forward_ref(data, raw):
    B = data.shape[0]
    aug = jnp.concatenate([jnp.ones((B, 1), jnp.float32), data], axis=1)
    fl_probs = _tree_probs_ref(BETA_FL * (aug @ raw["fl_inner_w"].T), FL_DEPTH)
    feats = (data @ raw["fl_leaf_w"].T).reshape(B * N_FL_LEAVES, NUM_INTERMEDIATE)
    aug_f = jnp.concatenate([jnp.ones((feats.shape[0], 1), jnp.float32), feats], axis=1)
    dc_probs = _tree_probs_ref(BETA_DC * (aug_f @ raw["dc_inner_w"].T), DC_DEPTH)
    dc_probs = dc_probs.reshape(B, N_FL_LEAVES, N_DC_LEAVES)
    mu = jnp.einsum("bl,bln->bn", fl_probs, dc_probs)
    leaf_dist = jax.nn.softmax(raw["dc_leaves"], axis=1) if CLASSIFICATION else raw["dc_leaves"]
    return mu @ leaf_dist


# ----------------------- main ------------------------------------------------
if __name__ == "__main__":
    key = jax.random.PRNGKey(0)
    k_data, k_fli, k_fll, k_dci, k_dcl = jax.random.split(key, 5)

    data = jax.random.normal(k_data, (BATCH, INPUT_DIM), jnp.float32)

    # raw parameters (PyTorch module shapes, deterministic synthetic init)
    raw = {
        "fl_inner_w": jax.random.normal(k_fli, (N_FL_INNER, INPUT_DIM + 1), jnp.float32) * 0.5,
        "fl_leaf_w": jax.random.normal(k_fll, (N_FL_LEAVES * NUM_INTERMEDIATE, INPUT_DIM), jnp.float32) * 0.5,
        "dc_inner_w": jax.random.normal(k_dci, (N_DC_INNER, NUM_INTERMEDIATE + 1), jnp.float32) * 0.5,
        "dc_leaves": jax.random.normal(k_dcl, (N_DC_LEAVES, OUTPUT_DIM), jnp.float32),
    }

    params = build_kernel_params(raw)

    prediction, output, _ = cdt_forward(data, params)
    output = jax.block_until_ready(output)

    expected = jax.block_until_ready(cdt_forward_ref(data, raw))
    # tolerance loosened slightly because of pl.reciprocal(approx=True) in the softmaxes
    np.testing.assert_allclose(np.asarray(output), np.asarray(expected),
                               rtol=5e-3, atol=5e-3)
    print("KERNEL_OK")
</pallas_src>

<mosaic_0001>
module attributes {stable_mosaic.version = 11 : i64} {
  func.func @cdt_kernel(%arg0: i32, %arg1: memref<128x16xf32, #tpu.memory_space<vmem>>, %arg2: memref<16x39xf32, #tpu.memory_space<vmem>>, %arg3: memref<1x3xf32, #tpu.memory_space<vmem>>, %arg4: memref<3x4xf32, #tpu.memory_space<vmem>>, %arg5: memref<1x4xf32, #tpu.memory_space<vmem>>, %arg6: memref<32x60xf32, #tpu.memory_space<vmem>>, %arg7: memref<1x28xf32, #tpu.memory_space<vmem>>, %arg8: memref<28x32xf32, #tpu.memory_space<vmem>>, %arg9: memref<1x32xf32, #tpu.memory_space<vmem>>, %arg10: memref<32x4xf32, #tpu.memory_space<vmem>>, %arg11: memref<4x32xf32, #tpu.memory_space<vmem>>, %arg12: memref<32x4xf32, #tpu.memory_space<vmem>>, %arg13: memref<128x4xf32, #tpu.memory_space<vmem>>) attributes {dimension_semantics = [#tpu.dimension_semantics<parallel>], iteration_bounds = array<i64: 2>, scalar_prefetch = 0 : i64, scratch_operands = 0 : i64, tpu.core_type = #tpu.core_type<tc>, window_params = [{transform_indices = @transform_0, window_bounds = array<i64: 128, 16>}, {pipeline_mode = #tpu.pipeline_mode<synchronous>, transform_indices = @transform_1, window_bounds = array<i64: 16, 39>}, {pipeline_mode = #tpu.pipeline_mode<synchronous>, transform_indices = @transform_2, window_bounds = array<i64: 1, 3>}, {pipeline_mode = #tpu.pipeline_mode<synchronous>, transform_indices = @transform_3, window_bounds = array<i64: 3, 4>}, {pipeline_mode = #tpu.pipeline_mode<synchronous>, transform_indices = @transform_4, window_bounds = array<i64: 1, 4>}, {pipeline_mode = #tpu.pipeline_mode<synchronous>, transform_indices = @transform_5, window_bounds = array<i64: 32, 60>}, {pipeline_mode = #tpu.pipeline_mode<synchronous>, transform_indices = @transform_6, window_bounds = array<i64: 1, 28>}, {pipeline_mode = #tpu.pipeline_mode<synchronous>, transform_indices = @transform_7, window_bounds = array<i64: 28, 32>}, {pipeline_mode = #tpu.pipeline_mode<synchronous>, transform_indices = @transform_8, window_bounds = array<i64: 1, 32>}, {pipeline_mode = #tpu.pipeline_mode<synchronous>, transform_indices = @transform_9, window_bounds = array<i64: 32, 4>}, {pipeline_mode = #tpu.pipeline_mode<synchronous>, transform_indices = @transform_10, window_bounds = array<i64: 4, 32>}, {pipeline_mode = #tpu.pipeline_mode<synchronous>, transform_indices = @transform_11, window_bounds = array<i64: 32, 4>}, {transform_indices = @transform_12, window_bounds = array<i64: 128, 4>}]} {
    %c0 = arith.constant 0 : index
    %c0_0 = arith.constant 0 : index
    %0 = vector.load %arg1[%c0, %c0_0] : memref<128x16xf32, #tpu.memory_space<vmem>>, vector<128x16xf32>
    %c0_1 = arith.constant 0 : index
    %c0_2 = arith.constant 0 : index
    %1 = vector.load %arg2[%c0_1, %c0_2] : memref<16x39xf32, #tpu.memory_space<vmem>>, vector<16x39xf32>
    %cst = arith.constant dense<0.000000e+00> : vector<128x39xf32>
    %2 = tpu.matmul %0, %1, %cst {dimension_numbers = #tpu.dot_dimension_numbers<[1], [0], [0], [1], [0, 0, 1, 1], [], []>} : vector<128x16xf32>, vector<16x39xf32>, vector<128x39xf32> -> vector<128x39xf32>
    %3 = vector.extract_strided_slice %2 {offsets = [0, 0], sizes = [128, 32], strides = [1, 1]} : vector<128x39xf32> to vector<128x32xf32>
    %4 = vector.extract_strided_slice %2 {offsets = [0, 32], sizes = [128, 3], strides = [1, 1]} : vector<128x39xf32> to vector<128x3xf32>
    %c0_3 = arith.constant 0 : index
    %c0_4 = arith.constant 0 : index
    %5 = vector.load %arg3[%c0_3, %c0_4] : memref<1x3xf32, #tpu.memory_space<vmem>>, vector<1x3xf32>
    %6 = vector.broadcast %5 : vector<1x3xf32> to vector<128x3xf32>
    %7 = arith.addf %4, %6 : vector<128x3xf32>
    %8 = vector.extract_strided_slice %2 {offsets = [0, 35], sizes = [128, 4], strides = [1, 1]} : vector<128x39xf32> to vector<128x4xf32>
    %c0_5 = arith.constant 0 : index
    %c0_6 = arith.constant 0 : index
    %9 = vector.load %arg5[%c0_5, %c0_6] : memref<1x4xf32, #tpu.memory_space<vmem>>, vector<1x4xf32>
    %10 = vector.broadcast %9 : vector<1x4xf32> to vector<128x4xf32>
    %11 = arith.addf %8, %10 : vector<128x4xf32>
    %12 = math.absf %7 : vector<128x3xf32>
    %c0_7 = arith.constant 0 : index
    %c0_8 = arith.constant 0 : index
    %13 = vector.load %arg4[%c0_7, %c0_8] : memref<3x4xf32, #tpu.memory_space<vmem>>, vector<3x4xf32>
    %cst_9 = arith.constant dense<0.000000e+00> : vector<128x4xf32>
    %14 = tpu.matmul %12, %13, %cst_9 {dimension_numbers = #tpu.dot_dimension_numbers<[1], [0], [0], [1], [0, 0, 1, 1], [], []>} : vector<128x3xf32>, vector<3x4xf32>, vector<128x4xf32> -> vector<128x4xf32>
    %15 = arith.addf %11, %14 : vector<128x4xf32>
    %cst_10 = arith.constant dense<0xFF800000> : vector<128xf32>
    %16 = vector.multi_reduction <maximumf>, %15, %cst_10 [1] : vector<128x4xf32> to vector<128xf32>
    %17 = vector.shape_cast %16 : vector<128xf32> to vector<128x1xf32>
    %18 = vector.broadcast %17 : vector<128x1xf32> to vector<128x4xf32>
    %19 = arith.subf %15, %18 : vector<128x4xf32>
    %20 = math.exp %19 : vector<128x4xf32>
    %cst_11 = arith.constant dense<0.000000e+00> : vector<128xf32>
    %21 = vector.multi_reduction <add>, %20, %cst_11 [1] : vector<128x4xf32> to vector<128xf32>
    %22 = vector.shape_cast %21 : vector<128xf32> to vector<128x1xf32>
    %c0_12 = arith.constant 0 : index
    %c0_13 = arith.constant 0 : index
    %23 = vector.load %arg6[%c0_12, %c0_13] : memref<32x60xf32, #tpu.memory_space<vmem>>, vector<32x60xf32>
    %cst_14 = arith.constant dense<0.000000e+00> : vector<128x60xf32>
    %24 = tpu.matmul %3, %23, %cst_14 {dimension_numbers = #tpu.dot_dimension_numbers<[1], [0], [0], [1], [0, 0, 1, 1], [], []>} : vector<128x32xf32>, vector<32x60xf32>, vector<128x60xf32> -> vector<128x60xf32>
    %25 = vector.extract_strided_slice %24 {offsets = [0, 0], sizes = [128, 28], strides = [1, 1]} : vector<128x60xf32> to vector<128x28xf32>
    %c0_15 = arith.constant 0 : index
    %c0_16 = arith.constant 0 : index
    %26 = vector.load %arg7[%c0_15, %c0_16] : memref<1x28xf32, #tpu.memory_space<vmem>>, vector<1x28xf32>
    %27 = vector.broadcast %26 : vector<1x28xf32> to vector<128x28xf32>
    %28 = arith.addf %25, %27 : vector<128x28xf32>
    %29 = vector.extract_strided_slice %24 {offsets = [0, 28], sizes = [128, 32], strides = [1, 1]} : vector<128x60xf32> to vector<128x32xf32>
    %c0_17 = arith.constant 0 : index
    %c0_18 = arith.constant 0 : index
    %30 = vector.load %arg9[%c0_17, %c0_18] : memref<1x32xf32, #tpu.memory_space<vmem>>, vector<1x32xf32>
    %31 = vector.broadcast %30 : vector<1x32xf32> to vector<128x32xf32>
    %32 = arith.addf %29, %31 : vector<128x32xf32>
    %33 = math.absf %28 : vector<128x28xf32>
    %c0_19 = arith.constant 0 : index
    %c0_20 = arith.constant 0 : index
    %34 = vector.load %arg8[%c0_19, %c0_20] : memref<28x32xf32, #tpu.memory_space<vmem>>, vector<28x32xf32>
    %cst_21 = arith.constant dense<0.000000e+00> : vector<128x32xf32>
    %35 = tpu.matmul %33, %34, %cst_21 {dimension_numbers = #tpu.dot_dimension_numbers<[1], [0], [0], [1], [0, 0, 1, 1], [], []>} : vector<128x28xf32>, vector<28x32xf32>, vector<128x32xf32> -> vector<128x32xf32>
    %36 = arith.addf %32, %35 : vector<128x32xf32>
    %cst_22 = arith.constant dense<0xFF800000> : vector<128xf32>
    %37 = vector.multi_reduction <maximumf>, %36, %cst_22 [1] : vector<128x32xf32> to vector<128xf32>
    %38 = vector.shape_cast %37 : vector<128xf32> to vector<128x1xf32>
    %39 = vector.broadcast %38 : vector<128x1xf32> to vector<128x32xf32>
    %40 = arith.subf %36, %39 : vector<128x32xf32>
    %41 = math.exp %40 : vector<128x32xf32>
    %c0_23 = arith.constant 0 : index
    %c0_24 = arith.constant 0 : index
    %42 = vector.load %arg10[%c0_23, %c0_24] : memref<32x4xf32, #tpu.memory_space<vmem>>, vector<32x4xf32>
    %cst_25 = arith.constant dense<0.000000e+00> : vector<128x4xf32>
    %43 = tpu.matmul %41, %42, %cst_25 {dimension_numbers = #tpu.dot_dimension_numbers<[1], [0], [0], [1], [0, 0, 1, 1], [], []>} : vector<128x32xf32>, vector<32x4xf32>, vector<128x4xf32> -> vector<128x4xf32>
    %44 = vector.broadcast %22 : vector<128x1xf32> to vector<128x4xf32>
    %45 = arith.mulf %44, %43 : vector<128x4xf32>
    %46 = tpu.reciprocal %45 {approx = true} : vector<128x4xf32> -> vector<128x4xf32>
    %47 = arith.mulf %20, %46 : vector<128x4xf32>
    %c0_26 = arith.constant 0 : index
    %c0_27 = arith.constant 0 : index
    %48 = vector.load %arg11[%c0_26, %c0_27] : memref<4x32xf32, #tpu.memory_space<vmem>>, vector<4x32xf32>
    %cst_28 = arith.constant dense<0.000000e+00> : vector<128x32xf32>
    %49 = tpu.matmul %47, %48, %cst_28 {dimension_numbers = #tpu.dot_dimension_numbers<[1], [0], [0], [1], [0, 0, 1, 1], [], []>} : vector<128x4xf32>, vector<4x32xf32>, vector<128x32xf32> -> vector<128x32xf32>
    %50 = arith.mulf %41, %49 : vector<128x32xf32>
    %c0_29 = arith.constant 0 : index
    %c0_30 = arith.constant 0 : index
    %51 = vector.load %arg12[%c0_29, %c0_30] : memref<32x4xf32, #tpu.memory_space<vmem>>, vector<32x4xf32>
    %cst_31 = arith.constant dense<0.000000e+00> : vector<128x4xf32>
    %52 = tpu.matmul %50, %51, %cst_31 {dimension_numbers = #tpu.dot_dimension_numbers<[1], [0], [0], [1], [0, 0, 1, 1], [], []>} : vector<128x32xf32>, vector<32x4xf32>, vector<128x4xf32> -> vector<128x4xf32>
    %c0_32 = arith.constant 0 : index
    %c0_33 = arith.constant 0 : index
    %53 = vector.load %arg13[%c0_32, %c0_33] : memref<128x4xf32, #tpu.memory_space<vmem>>, vector<128x4xf32>
    tpu.vector_store %arg13[%c0_32, %c0_33], %52 {strides = array<i32>} : memref<128x4xf32, #tpu.memory_space<vmem>>, vector<128x4xf32>,
    return
  }
  func.func @transform_0(%arg0: i32) -> (i32, i32) {
    %c0_i32 = arith.constant 0 : i32
    %c0_i32_0 = arith.constant 0 : i32
    return %arg0, %c0_i32 : i32, i32
  }
  func.func @transform_1(%arg0: i32) -> (i32, i32) {
    %c0_i32 = arith.constant 0 : i32
    %c0_i32_0 = arith.constant 0 : i32
    %c0_i32_1 = arith.constant 0 : i32
    return %c0_i32, %c0_i32_0 : i32, i32
  }
  func.func @transform_2(%arg0: i32) -> (i32, i32) {
    %c0_i32 = arith.constant 0 : i32
    %c0_i32_0 = arith.constant 0 : i32
    %c0_i32_1 = arith.constant 0 : i32
    return %c0_i32, %c0_i32_0 : i32, i32
  }
  func.func @transform_3(%arg0: i32) -> (i32, i32) {
    %c0_i32 = arith.constant 0 : i32
    %c0_i32_0 = arith.constant 0 : i32
    %c0_i32_1 = arith.constant 0 : i32
    return %c0_i32, %c0_i32_0 : i32, i32
  }
  func.func @transform_4(%arg0: i32) -> (i32, i32) {
    %c0_i32 = arith.constant 0 : i32
    %c0_i32_0 = arith.constant 0 : i32
    %c0_i32_1 = arith.constant 0 : i32
    return %c0_i32, %c0_i32_0 : i32, i32
  }
  func.func @transform_5(%arg0: i32) -> (i32, i32) {
    %c0_i32 = arith.constant 0 : i32
    %c0_i32_0 = arith.constant 0 : i32
    %c0_i32_1 = arith.constant 0 : i32
    return %c0_i32, %c0_i32_0 : i32, i32
  }
  func.func @transform_6(%arg0: i32) -> (i32, i32) {
    %c0_i32 = arith.constant 0 : i32
    %c0_i32_0 = arith.constant 0 : i32
    %c0_i32_1 = arith.constant 0 : i32
    return %c0_i32, %c0_i32_0 : i32, i32
  }
  func.func @transform_7(%arg0: i32) -> (i32, i32) {
    %c0_i32 = arith.constant 0 : i32
    %c0_i32_0 = arith.constant 0 : i32
    %c0_i32_1 = arith.constant 0 : i32
    return %c0_i32, %c0_i32_0 : i32, i32
  }
  func.func @transform_8(%arg0: i32) -> (i32, i32) {
    %c0_i32 = arith.constant 0 : i32
    %c0_i32_0 = arith.constant 0 : i32
    %c0_i32_1 = arith.constant 0 : i32
    return %c0_i32, %c0_i32_0 : i32, i32
  }
  func.func @transform_9(%arg0: i32) -> (i32, i32) {
    %c0_i32 = arith.constant 0 : i32
    %c0_i32_0 = arith.constant 0 : i32
    %c0_i32_1 = arith.constant 0 : i32
    return %c0_i32, %c0_i32_0 : i32, i32
  }
  func.func @transform_10(%arg0: i32) -> (i32, i32) {
    %c0_i32 = arith.constant 0 : i32
    %c0_i32_0 = arith.constant 0 : i32
    %c0_i32_1 = arith.constant 0 : i32
    return %c0_i32, %c0_i32_0 : i32, i32
  }
  func.func @transform_11(%arg0: i32) -> (i32, i32) {
    %c0_i32 = arith.constant 0 : i32
    %c0_i32_0 = arith.constant 0 : i32
    %c0_i32_1 = arith.constant 0 : i32
    return %c0_i32, %c0_i32_0 : i32, i32
  }
  func.func @transform_12(%arg0: i32) -> (i32, i32) {
    %c0_i32 = arith.constant 0 : i32
    %c0_i32_0 = arith.constant 0 : i32
    return %arg0, %c0_i32 : i32, i32
  }
}

</mosaic_0001>

<bundles_post_ra>
// kernel: tpu_custom_call.1
= control target key start
LH: loop header
LB: loop body
LE: loop exit
PB: predicated region body
PF: predicated region fallthrough
CT: control target
= control target key end

     0   :  { %s2562_s21 = smov 0   ;;  %s3551_s0 = inlined_call_operand.vmem [shape: f32[256,16], index: 0, kind: input, shape index: {}]   ;;  %s3552_s1 = inlined_call_operand.vmem [shape: f32[16,39], index: 1, kind: input, shape index: {}]   ;;  %s3553_s2 = inlined_call_operand.vmem [shape: f32[1,3], index: 2, kind: input, shape index: {}]   ;;  %s3554_s3 = inlined_call_operand.vmem [shape: f32[3,4], index: 3, kind: input, shape index: {}]   ;;  %s3555_s4 = inlined_call_operand.vmem [shape: f32[1,4], index: 4, kind: input, shape index: {}]   ;;  %s3556_s5 = inlined_call_operand.vmem [shape: f32[32,60], index: 5, kind: input, shape index: {}]   ;;  %s3557_s6 = inlined_call_operand.vmem [shape: f32[1,28], index: 6, kind: input, shape index: {}]   ;;  %s3558_s7 = inlined_call_operand.vmem [shape: f32[28,32], index: 7, kind: input, shape index: {}]   ;;  %s3559_s8 = inlined_call_operand.vmem [shape: f32[1,32], index: 8, kind: input, shape index: {}]   ;;  %s3560_s9 = inlined_call_operand.vmem [shape: f32[32,4], index: 9, kind: input, shape index: {}]   ;;  %s3561_s10 = inlined_call_operand.vmem [shape: f32[4,32], index: 10, kind: input, shape index: {}]   ;;  %s3562_s11 = inlined_call_operand.vmem [shape: f32[32,4], index: 11, kind: input, shape index: {}]   ;;  %s3563_s12 = inlined_call_operand.vmem [shape: f32[256,4], index: 12, kind: output, shape index: {}]  }
   0x1 LB: > { %s2236_s22 = sadd.s32 4294967295, %s2489_s21   ;;  %p2240_p0 = scmp.ge.s32.totalorder %s2489_s21, 1  ;;  %s2489_s21 = sphi %s2562_s21, %s22_s21  }
   0x2   : > { %p363_p1 = scmp.lt.s32.totalorder %s2489_s21, 3 }
   0x4   : > { %p364_p2 = pnand %p2240_p0, %p363_p1 }
   0x5   : > { %s2241_s27 = sshll.u32 (!%p364_p2), %s2236_s22, 4  ;;  %s2491_s30 = smov (!%p364_p2), 32  }
   0x6   : > { %367 = sbr.rel (%p364_p2) target bundleno = 2201 (0x899), region = 68  ;;  %p406_p3 = scmp.lt.s32.totalorder (!%p364_p2), %s2241_s27, 31 }
   0x7   : > { %s2492_s19 = smov (!%p364_p2), 35   ;;  %s2493_s28 = smov (!%p364_p2), 28  }
   0x8   : > { %s2496_s17 = smov (!%p364_p2), 100  }
   0xb   : > { %v434_v0 = vld [vmem:[%s3552_s1 + $0x8] sm:$0xff]  ;;  %v433_v1 = vld [vmem:[%s3552_s1] sm:$0xff]  ;;  %s3565_s27 = smov (!%p406_p3, %s2241_s27), 31  ;;  %vm435_vm0 = vcmask 130048   ;;  %v2620_v16 = vld [vmem:[%s3556_s5 + $0x18] sm:$0xff]  ;;  %vm1054_vm1 = vcmask 261120  }
   0xc   : > { %498 = vmatpush.msra.mxu0 %v434_v0  ;;  %2362 = vmatpush.msra.mxu3 %v434_v0  ;;  %v2383_v2 = vld [vmem:[%s3553_s2] ss:$0 sm:$0xff]  ;;  %s2242_s13 = sshll.u32 %s3565_s27, 3  ;;  %v2625_v17 = vld [vmem:[%s3556_s5 + $0x10] sm:$0xff]  ;;  %v2635_v19 = vld [vmem:[%s3556_s5 + $0x8] sm:$0xff]  ;;  %vm691_vm2 = vcmask 1042432  }
   0xd   : > { %552 = vrot.lane.b32.xlu0 %v2383_v2, %s2491_s30  ;;  %s2587_s16 = scalar_lea.vmem %s3551_s0, %s2242_s13  ;;  %v2384_v5 = vld [vmem:[%s3555_s4] ss:$0 sm:$0xff]  ;;  %1115 = vmatpush.msra.mxu2 %v2620_v16  ;;  %vm658_vm3 = vcmask 23552   ;;  %vm1279_vm4 = vcmask 1043456   ;;  %vm1230_vm5 = vcmask 228352   ;;  %vm840_vm6 = vcmask 318744   ;;  %s3505_s26 = scalar_lea.vmem %s3563_s12, %s2242_s13 }
   0xe   : > { %499 = vmatpush.msra.mxu0 %v433_v1  ;;  %2363 = vmatpush.msra.mxu3 %v433_v1  ;;  %v417_v3 = vld [vmem:[%s2587_s16] sm:$0xff]  ;;  %v418_v6 = vld [vmem:[%s2587_s16 + $0x8] sm:$0xff]  ;;  %v419_v8 = vld [vmem:[%s2587_s16 + $0x10] sm:$0xff]  ;;  %vm1428_vm7 = vcmask 490720   ;;  %vm1001_vm8 = vcmask 31744  }
   0xf   : > { %v429_v4 = vld [vmem:[%s2587_s16 + $0x60] sm:$0xff]  ;;  %2245 = vmatmul.msk.f32.vlgmr.msra.gmra.mxu0 %vm435_vm0, %v417_v3  ;;  %v430_v7 = vld [vmem:[%s2587_s16 + $0x68] sm:$0xff]  ;;  %v431_v9 = vld [vmem:[%s2587_s16 + $0x70] sm:$0xff]  ;;  %1116 = vmatpush.msra.mxu2 %v2625_v17 }
  0x10   : > { %2257 = vmatmul.msk.f32.vlgmr.msra.gmra.mxu3 %vm435_vm0, %v429_v4  ;;  %v420_v10 = vld [vmem:[%s2587_s16 + $0x18] sm:$0xff]  ;;  %v421_v12 = vld [vmem:[%s2587_s16 + $0x20] sm:$0xff]  ;;  %v422_v13 = vld [vmem:[%s2587_s16 + $0x28] sm:$0xff] }
  0x11   : > { %v432_v11 = vld [vmem:[%s2587_s16 + $0x78] sm:$0xff]  ;;  %v423_v14 = vld [vmem:[%s2587_s16 + $0x30] sm:$0xff]  ;;  %v2385_v18 = vld [vmem:[%s3559_s8] ss:$0 sm:$0xff]  ;;  %1117 = vmatpush.msra.mxu2 %v2635_v19 }
  0x12   : > { %v424_v15 = vld [vmem:[%s2587_s16 + $0x38] sm:$0xff]  ;;  %1191 = vrot.lane.b32.xlu2 %v2385_v18, %s2493_s28  ;;  %v425_v20 = vld [vmem:[%s2587_s16 + $0x40] sm:$0xff]  ;;  %v426_v21 = vld [vmem:[%s2587_s16 + $0x48] sm:$0xff] }
  0x13   : > { %v427_v22 = vld [vmem:[%s2587_s16 + $0x50] sm:$0xff]  ;;  %v428_v23 = vld [vmem:[%s2587_s16 + $0x58] sm:$0xff]  ;;  %v2650_v24 = vld [vmem:[%s3556_s5] sm:$0xff]  ;;  %s2494_s16 = smov 96  }
  0x14   : > { %1118 = vmatpush.msra.mxu2 %v2650_v24  ;;  %v609_v62 = vld [vmem:[%s3554_s3] sm:$0x7] }
  0x15   : > { %574 = vrot.lane.b32.xlu0 %v2384_v5, %s2492_s19  ;;  %2261 = vmatpush.msk.msra.mxu1 %vm691_vm2, %v609_v62 }
  0x16   : > { %2364 = vmatpush.msk.msrb.mxu3 %vm691_vm2, %v609_v62 }
  0x17   : > { %2246 = vmatmul.msk.f32.gmra.mxu0 %vm435_vm0, %v418_v6 }
  0x18   : > { %2258 = vmatmul.msk.f32.gmra.mxu3 %vm435_vm0, %v430_v7 }
  0x19   : > { %2365 = vmatpush.msra.mxu3 %v2620_v16 }
  0x1b   : > { %2366 = vmatpush.msra.mxu3 %v2625_v17  ;;  %v1229_v17 = vld [vmem:[%s3558_s7 + $0x18] sm:$0xf] }
  0x1d   : > { %2367 = vmatpush.msra.mxu3 %v2635_v19 }
  0x1f   : > { %2247 = vmatmul.msk.f32.gmra.mxu0 %vm435_vm0, %v419_v8  ;;  %2368 = vmatpush.msra.mxu3 %v2650_v24 }
  0x20   : > { %2259 = vmatmul.msk.f32.gmra.mxu3 %vm435_vm0, %v431_v9 }
  0x27   : > { %2248 = vmatmul.msk.f32.gmra.mxu0 %vm435_vm0, %v420_v10 }
  0x28   : > { %2260 = vmatmul.msk.f32.gmra.mxu3 %vm435_vm0, %v432_v11 }
  0x2f   : > { %2249 = vmatmul.msk.f32.gmra.mxu0 %vm435_vm0, %v421_v12 }
  0x37   : > { %2250 = vmatmul.msk.f32.gmra.mxu0 %vm435_vm0, %v422_v13 }
  0x3f   : > { %2251 = vmatmul.msk.f32.gmra.mxu0 %vm435_vm0, %v423_v14 }
  0x47   : > { %2252 = vmatmul.msk.f32.gmra.mxu0 %vm435_vm0, %v424_v15 }
  0x4f   : > { %2253 = vmatmul.msk.f32.gmra.mxu0 %vm435_vm0, %v425_v20  ;;  %v1228_v20 = vld [vmem:[%s3558_s7 + $0x10] sm:$0xff] }
  0x57   : > { %2254 = vmatmul.msk.f32.gmra.mxu0 %vm435_vm0, %v426_v21 }
  0x5f   : > { %2255 = vmatmul.msk.f32.gmra.mxu0 %vm435_vm0, %v427_v22  ;;  %v1227_v22 = vld [vmem:[%s3558_s7 + $0x8] sm:$0xff] }
  0x67   : > { %2256 = vmatmul.msk.f32.gmra.mxu0 %vm435_vm0, %v428_v23 }
  0x6c   : > { %v2759_v8 = vpop.permute.xlu2 %1191 }
  0x7f   : > { %v2653_v25 = vpop.permute.xlu0 %552 }
  0x87   : > { %v2770_v14 = vpop.permute.xlu0 %574 }
  0x8c   : > { %v2655_v26 = vpop.f32.mrf.mxu0 }
  0x8d   : > { %2278 = vmatmul.msk.f32.vlgmr.msra.gmra.mxu2 %vm1054_vm1, %v2655_v26  ;;  %v555_v27 = vadd.f32 %v2653_v25, %v2655_v26 }
  0x8f   : > { %v593_v28 = vand.u32 2147483647, %v555_v27 }
  0x91   : > { %626 = vrot.lane.b32.xlu2 %v593_v28, %s2494_s16 }
  0x93   : > { %v2662_v29 = vpop.f32.mrf.mxu3 }
  0x94   : > { %v567_v30 = vadd.f32 %v2653_v25, %v2662_v29  ;;  %v2666_v31 = vpop.f32.mrf.mxu0 }
  0x95   : > { %2279 = vmatmul.msk.f32.gmra.mxu2 %vm1054_vm1, %v2666_v31  ;;  %v556_v33 = vadd.f32 %v2653_v25, %v2666_v31 }
  0x96   : > { %v605_v32 = vand.u32 2147483647, %v567_v30 }
  0x97   : > { %v594_v34 = vand.u32 2147483647, %v556_v33 }
  0x98   : > { %650 = vrot.lane.b32.xlu1 %v605_v32, %s2494_s16 }
  0x99   : > { %628 = vrot.lane.b32.xlu2 %v594_v34, %s2494_s16 }
  0x9b   : > { %v2674_v35 = vpop.f32.mrf.mxu3 }
  0x9c   : > { %v568_v36 = vadd.f32 %v2653_v25, %v2674_v35  ;;  %v2678_v37 = vpop.f32.mrf.mxu0 }
  0x9d   : > { %2280 = vmatmul.msk.f32.gmra.mxu2 %vm1054_vm1, %v2678_v37  ;;  %v557_v39 = vadd.f32 %v2653_v25, %v2678_v37 }
  0x9e   : > { %v606_v38 = vand.u32 2147483647, %v568_v36  ;;  %v2809_v36 = vld [vmem:[%s3557_s6] ss:$0 sm:$0xff] }
  0x9f   : > { %v595_v44 = vand.u32 2147483647, %v557_v39 }
  0xa0   : > { %652 = vrot.lane.b32.xlu0 %v606_v38, %s2494_s16 }
  0xa3   : > { %v2685_v40 = vpop.f32.mrf.mxu3 }
  0xa4   : > { %v569_v41 = vadd.f32 %v2653_v25, %v2685_v40  ;;  %v2689_v42 = vpop.f32.mrf.mxu0 }
  0xa5   : > { %2281 = vmatmul.msk.f32.gmra.mxu2 %vm1054_vm1, %v2689_v42  ;;  %v558_v45 = vadd.f32 %v2653_v25, %v2689_v42 }
  0xa6   : > { %v607_v43 = vand.u32 2147483647, %v569_v41 }
  0xa7   : > { %v596_v48 = vand.u32 2147483647, %v558_v45 }
  0xa8   : > { %654 = vrot.lane.b32.xlu1 %v607_v43, %s2494_s16  ;;  %630 = vrot.lane.b32.xlu0 %v595_v44, %s2494_s16 }
  0xab   : > { %v2703_v49 = vpop.f32.mrf.mxu3 }
  0xac   : > { %v2697_v46 = vpop.f32.mrf.mxu0  ;;  %v570_v51 = vadd.f32 %v2653_v25, %v2703_v49 }
  0xad   : > { %v559_v47 = vadd.f32 %v2653_v25, %v2697_v46  ;;  %2282 = vmatmul.msk.f32.gmra.mxu2 %vm1054_vm1, %v2697_v46 }
  0xae   : > { %v608_v54 = vand.u32 2147483647, %v570_v51 }
  0xaf   : > { %v597_v50 = vand.u32 2147483647, %v559_v47 }
  0xb0   : > { %632 = vrot.lane.b32.xlu1 %v596_v48, %s2494_s16 }
  0xb1   : > { %634 = vrot.lane.b32.xlu2 %v597_v50, %s2494_s16 }
  0xb4   : > { %v2709_v52 = vpop.f32.mrf.mxu0 }
  0xb5   : > { %v560_v53 = vadd.f32 %v2653_v25, %v2709_v52  ;;  %2283 = vmatmul.msk.f32.gmra.mxu2 %vm1054_vm1, %v2709_v52 }
  0xb7   : > { %v598_v55 = vand.u32 2147483647, %v560_v53 }
  0xb8   : > { %656 = vrot.lane.b32.xlu1 %v608_v54, %s2494_s16 }
  0xb9   : > { %636 = vrot.lane.b32.xlu0 %v598_v55, %s2494_s16 }
  0xbc   : > { %v2717_v56 = vpop.f32.mrf.mxu0 }
  0xbd   : > { %v561_v57 = vadd.f32 %v2653_v25, %v2717_v56  ;;  %2284 = vmatmul.msk.f32.gmra.mxu2 %vm1054_vm1, %v2717_v56 }
  0xbf   : > { %v599_v58 = vand.u32 2147483647, %v561_v57 }
  0xc1   : > { %638 = vrot.lane.b32.xlu1 %v599_v58, %s2494_s16 }
  0xc4   : > { %v2724_v59 = vpop.f32.mrf.mxu0 }
  0xc5   : > { %v562_v60 = vadd.f32 %v2653_v25, %v2724_v59  ;;  %2285 = vmatmul.msk.f32.gmra.mxu2 %vm1054_vm1, %v2724_v59 }
  0xc7   : > { %v600_v61 = vand.u32 2147483647, %v562_v60 }
  0xc9   : > { %640 = vrot.lane.b32.xlu2 %v600_v61, %s2494_s16 }
  0xcc   : > { %v2735_v63 = vpop.f32.mrf.mxu0 }
  0xcd   : > { %v563_v0 = vadd.f32 %v2653_v25, %v2735_v63  ;;  %2286 = vmatmul.msk.f32.gmra.mxu2 %vm1054_vm1, %v2735_v63 }
  0xcf   : > { %v601_v1 = vand.u32 2147483647, %v563_v0 }
  0xd1   : > { %642 = vrot.lane.b32.xlu0 %v601_v1, %s2494_s16 }
  0xd4   : > { %v2745_v2 = vpop.f32.mrf.mxu0 }
  0xd5   : > { %v564_v3 = vadd.f32 %v2653_v25, %v2745_v2  ;;  %2287 = vmatmul.msk.f32.gmra.mxu2 %vm1054_vm1, %v2745_v2 }
  0xd7   : > { %v602_v4 = vand.u32 2147483647, %v564_v3 }
  0xd9   : > { %644 = vrot.lane.b32.xlu1 %v602_v4, %s2494_s16 }
  0xdc   : > { %v2752_v5 = vpop.f32.mrf.mxu0 }
  0xdd   : > { %v565_v6 = vadd.f32 %v2653_v25, %v2752_v5  ;;  %2288 = vmatmul.msk.f32.gmra.mxu2 %vm1054_vm1, %v2752_v5 }
  0xdf   : > { %v603_v7 = vand.u32 2147483647, %v565_v6 }
  0xe1   : > { %646 = vrot.lane.b32.xlu0 %v603_v7, %s2494_s16 }
  0xe4   : > { %v2761_v9 = vpop.f32.mrf.mxu0 }
  0xe5   : > { %v566_v10 = vadd.f32 %v2653_v25, %v2761_v9  ;;  %2289 = vmatmul.msk.f32.gmra.mxu2 %vm1054_vm1, %v2761_v9  ;;  %v1226_v25 = vld [vmem:[%s3558_s7] sm:$0xff] }
  0xe7   : > { %v604_v11 = vand.u32 2147483647, %v566_v10 }
  0xe9   : > { %648 = vrot.lane.b32.xlu2 %v604_v11, %s2494_s16  ;;  %s2495_s16 = smov 93  }
  0xeb   : > { %v627_v12 = vpop.permute.xlu2 %626 }
  0xec   : > { %2262 = vmatmul.msk.f32.vlgmr.msra.gmra.mxu1 %vm658_vm3, %v627_v12 }
  0xf3   : > { %v629_v13 = vpop.permute.xlu2 %628 }
  0xf4   : > { %2263 = vmatmul.msk.f32.gmra.mxu1 %vm658_vm3, %v629_v13 }
 0x10a   : > { %v651_v15 = vpop.permute.xlu1 %650 }
 0x10b   : > { %v635_v23 = vpop.permute.xlu2 %634 }
 0x110   : > { %v2794_v28 = vpop.f32.mrf.mxu2 }
 0x111   : > { %v1172_v39 = vadd.f32 %v2809_v36, %v2794_v28 }
 0x112   : > { %v653_v16 = vpop.permute.xlu0 %652 }
 0x113   : > { %2275 = vmatmul.msk.f32.vlgmr.msrb.gmra.mxu3 %vm658_vm3, %v653_v16  ;;  %v1210_v41 = vand.u32 2147483647, %v1172_v39 }
 0x114   : > { %2294 = vmatpush.msk.msrb.mxu3 %vm1279_vm4, %v1229_v17 }
 0x116   : > { %1296 = vmatpush.msrb.mxu3 %v1228_v20 }
 0x118   : > { %1297 = vmatpush.msrb.mxu3 %v1227_v22  ;;  %v2799_v32 = vpop.f32.mrf.mxu2 }
 0x119   : > { %v1173_v45 = vadd.f32 %v2809_v36, %v2799_v32 }
 0x11a   : > { %v655_v18 = vpop.permute.xlu1 %654  ;;  %v631_v19 = vpop.permute.xlu0 %630  ;;  %1298 = vmatpush.msrb.mxu3 %v1226_v25 }
 0x11b   : > { %2264 = vmatmul.msk.f32.gmra.mxu1 %vm658_vm3, %v631_v19  ;;  %2276 = vmatmul.msk.f32.gmra.mxu3 %vm658_vm3, %v655_v18  ;;  %v1211_v47 = vand.u32 2147483647, %v1173_v45 }
 0x120   : > { %v2804_v34 = vpop.f32.mrf.mxu2 }
 0x121   : > { %v1174_v51 = vadd.f32 %v2809_v36, %v2804_v34 }
 0x122   : > { %v633_v21 = vpop.permute.xlu1 %632 }
 0x123   : > { %2265 = vmatmul.msk.f32.gmra.mxu1 %vm658_vm3, %v633_v21  ;;  %v641_v33 = vpop.permute.xlu2 %640  ;;  %v1212_v53 = vand.u32 2147483647, %v1174_v51 }
 0x128   : > { %v2816_v43 = vpop.f32.mrf.mxu2 }
 0x129   : > { %v1175_v55 = vadd.f32 %v2809_v36, %v2816_v43 }
 0x12a   : > { %v657_v24 = vpop.permute.xlu1 %656 }
 0x12b   : > { %2266 = vmatmul.msk.f32.gmra.mxu1 %vm658_vm3, %v635_v23  ;;  %2277 = vmatmul.msk.f32.gmra.mxu3 %vm658_vm3, %v657_v24  ;;  %v637_v27 = vpop.permute.xlu0 %636  ;;  %v1213_v58 = vand.u32 2147483647, %v1175_v55 }
 0x130   : > { %v2824_v50 = vpop.f32.mrf.mxu2 }
 0x131   : > { %v1176_v61 = vadd.f32 %v2809_v36, %v2824_v50 }
 0x133   : > { %2267 = vmatmul.msk.f32.gmra.mxu1 %vm658_vm3, %v637_v27  ;;  %2290 = vmatmul.msk.f32.vlgmr.msra.gmra.mxu3 %vm1054_vm1, %v2662_v29  ;;  %v639_v30 = vpop.permute.xlu1 %638  ;;  %v1214_v0 = vand.u32 2147483647, %v1176_v61 }
 0x138   : > { %v2832_v57 = vpop.f32.mrf.mxu2 }
 0x139   : > { %v1177_v3 = vadd.f32 %v2809_v36, %v2832_v57 }
 0x13b   : > { %2268 = vmatmul.msk.f32.gmra.mxu1 %vm658_vm3, %v639_v30  ;;  %2291 = vmatmul.msk.f32.gmra.mxu3 %vm1054_vm1, %v2674_v35  ;;  %v1215_v4 = vand.u32 2147483647, %v1177_v3 }
 0x140   : > { %v2839_v62 = vpop.f32.mrf.mxu2 }
 0x141   : > { %v1178_v7 = vadd.f32 %v2809_v36, %v2839_v62 }
 0x143   : > { %2269 = vmatmul.msk.f32.gmra.mxu1 %vm658_vm3, %v641_v33  ;;  %2292 = vmatmul.msk.f32.gmra.mxu3 %vm1054_vm1, %v2685_v40  ;;  %v643_v38 = vpop.permute.xlu0 %642  ;;  %v649_v54 = vpop.permute.xlu2 %648  ;;  %v1216_v10 = vand.u32 2147483647, %v1178_v7 }
 0x148   : > { %v2845_v6 = vpop.f32.mrf.mxu2 }
 0x149   : > { %v1179_v12 = vadd.f32 %v2809_v36, %v2845_v6 }
 0x14b   : > { %2270 = vmatmul.msk.f32.gmra.mxu1 %vm658_vm3, %v643_v38  ;;  %2293 = vmatmul.msk.f32.gmra.mxu3 %vm1054_vm1, %v2703_v49  ;;  %v645_v44 = vpop.permute.xlu1 %644  ;;  %v1217_v13 = vand.u32 2147483647, %v1179_v12 }
 0x150   : > { %v2851_v11 = vpop.f32.mrf.mxu2 }
 0x153   : > { %2271 = vmatmul.msk.f32.gmra.mxu1 %vm658_vm3, %v645_v44  ;;  %2295 = vmatmul.msk.f32.vlgmr.msrb.gmra.mxu3 %vm1230_vm5, %v1210_v41  ;;  %v647_v48 = vpop.permute.xlu0 %646 }
 0x158   : > { %v2858_v16 = vpop.f32.mrf.mxu2 }
 0x159   : > { %v1181_v18 = vadd.f32 %v2809_v36, %v2858_v16 }
 0x15b   : > { %2272 = vmatmul.msk.f32.gmra.mxu1 %vm658_vm3, %v647_v48  ;;  %2296 = vmatmul.msk.f32.gmra.mxu3 %vm1230_vm5, %v1211_v47  ;;  %v1219_v21 = vand.u32 2147483647, %v1181_v18 }
 0x160   : > { %v2863_v19 = vpop.f32.mrf.mxu2 }
 0x161   : > { %v1182_v23 = vadd.f32 %v2809_v36, %v2863_v19 }
 0x163   : > { %2273 = vmatmul.msk.f32.gmra.mxu1 %vm658_vm3, %v649_v54  ;;  %2297 = vmatmul.msk.f32.gmra.mxu3 %vm1230_vm5, %v1212_v53  ;;  %v1220_v25 = vand.u32 2147483647, %v1182_v23 }
 0x168   : > { %v2871_v27 = vpop.f32.mrf.mxu2 }
 0x169   : > { %v712_v60 = vpop.f32.mrf.mxu1  ;;  %v1183_v30 = vadd.f32 %v2809_v36, %v2871_v27 }
 0x16a   : > { %776 = vrot.lane.b32.xlu2 %v712_v60, %s2492_s19 }
 0x16b   : > { %2298 = vmatmul.msk.f32.gmra.mxu3 %vm1230_vm5, %v1213_v58  ;;  %2274 = vmatmul.msk.f32.gmra.mxu1 %vm658_vm3, %v651_v15  ;;  %v1180_v15 = vadd.f32 %v2809_v36, %v2851_v11  ;;  %v1221_v38 = vand.u32 2147483647, %v1183_v30 }
 0x16d   : > { %v1218_v17 = vand.u32 2147483647, %v1180_v15 }
 0x171   : > { %v715_v1 = vpop.f32.mrf.mxu1 }
 0x172   : > { %778 = vrot.lane.b32.xlu2 %v715_v1, %s2492_s19 }
 0x173   : > { %2299 = vmatmul.msk.f32.gmra.mxu3 %vm1230_vm5, %v1214_v0 }
 0x17b   : > { %2300 = vmatmul.msk.f32.gmra.mxu3 %vm1230_vm5, %v1215_v4 }
 0x183   : > { %2301 = vmatmul.msk.f32.gmra.mxu3 %vm1230_vm5, %v1216_v10 }
 0x18b   : > { %2302 = vmatmul.msk.f32.gmra.mxu3 %vm1230_vm5, %v1217_v13 }
 0x193   : > { %2303 = vmatmul.msk.f32.gmra.mxu3 %vm1230_vm5, %v1218_v17 }
 0x196   : > { %v751_v22 = vpop.f32.mrf.mxu3 }
 0x198   : > { %v718_v20 = vpop.f32.mrf.mxu1 }
 0x199   : > { %780 = vrot.lane.b32.xlu2 %v718_v20, %s2492_s19 }
 0x19b   : > { %2304 = vmatmul.msk.f32.gmra.mxu3 %vm1230_vm5, %v1219_v21 }
 0x19e   : > { %v754_v33 = vpop.f32.mrf.mxu3 }
 0x1a0   : > { %v721_v24 = vpop.f32.mrf.mxu1 }
 0x1a1   : > { %782 = vrot.lane.b32.xlu0 %v721_v24, %s2492_s19  ;;  %802 = vrot.lane.b32.xlu2 %v751_v22, %s2492_s19 }
 0x1a3   : > { %2305 = vmatmul.msk.f32.gmra.mxu3 %vm1230_vm5, %v1220_v25 }
 0x1a8   : > { %v724_v39 = vpop.f32.mrf.mxu1 }
 0x1a9   : > { %804 = vrot.lane.b32.xlu2 %v754_v33, %s2492_s19  ;;  %v577_v33 = vadd.f32 %v2770_v14, %v2655_v26 }
 0x1ab   : > { %2306 = vmatmul.msk.f32.gmra.mxu3 %vm1230_vm5, %v1221_v38 }
 0x1ae   : > { %v757_v41 = vpop.f32.mrf.mxu3 }
 0x1af   : > { %806 = vrot.lane.b32.xlu0 %v757_v41, %s2492_s19 }
 0x1b0   : > { %v727_v44 = vpop.f32.mrf.mxu1 }
 0x1b1   : > { %784 = vrot.lane.b32.xlu2 %v724_v39, %s2492_s19 }
 0x1b6   : > { %v2880_v45 = vpop.f32.mrf.mxu3 }
 0x1b7   : > { %v1184_v47 = vadd.f32 %v2809_v36, %v2880_v45 }
 0x1b8   : > { %v730_v48 = vpop.f32.mrf.mxu1 }
 0x1b9   : > { %v1222_v51 = vand.u32 2147483647, %v1184_v47  ;;  %788 = vrot.lane.b32.xlu0 %v730_v48, %s2492_s19  ;;  %786 = vrot.lane.b32.xlu2 %v727_v44, %s2492_s19  ;;  %v578_v47 = vadd.f32 %v2770_v14, %v2666_v31 }
 0x1bb   : > { %2307 = vmatmul.msk.f32.gmra.mxu3 %vm1230_vm5, %v1222_v51 }
 0x1be   : > { %v2887_v53 = vpop.f32.mrf.mxu3 }
 0x1bf   : > { %v1185_v54 = vadd.f32 %v2809_v36, %v2887_v53 }
 0x1c0   : > { %v733_v55 = vpop.f32.mrf.mxu1 }
 0x1c1   : > { %v1223_v58 = vand.u32 2147483647, %v1185_v54  ;;  %790 = vrot.lane.b32.xlu1 %v733_v55, %s2492_s19  ;;  %v590_v54 = vadd.f32 %v2770_v14, %v2674_v35 }
 0x1c3   : > { %2308 = vmatmul.msk.f32.gmra.mxu3 %vm1230_vm5, %v1223_v58 }
 0x1c4   : > { %v777_v23 = vpop.permute.xlu2 %776 }
 0x1c5   : > { %v2918_v38 = vadd.f32 %v777_v23, %v577_v33 }
 0x1c6   : > { %v2893_v60 = vpop.f32.mrf.mxu3 }
 0x1c7   : > { %v1186_v61 = vadd.f32 %v2809_v36, %v2893_v60  ;;  %v841_v44 = vsel %vm840_vm6, %v2918_v38, -inf }
 0x1c8   : > { %v736_v0 = vpop.f32.mrf.mxu1 }
 0x1c9   : > { %v1224_v1 = vand.u32 2147483647, %v1186_v61  ;;  %792 = vrot.lane.b32.xlu2 %v736_v0, %s2492_s19  ;;  %v579_v61 = vadd.f32 %v2770_v14, %v2678_v37  ;;  %v591_v37 = vadd.f32 %v2770_v14, %v2685_v40  ;;  %v592_v40 = vadd.f32 %v2770_v14, %v2703_v49 }
 0x1cb   : > { %2309 = vmatmul.msk.f32.gmra.mxu3 %vm1230_vm5, %v1224_v1 }
 0x1cc   : > { %v779_v30 = vpop.permute.xlu2 %778 }
 0x1cd   : > { %v2925_v48 = vadd.f32 %v779_v30, %v578_v47  ;;  %v583_v30 = vadd.f32 %v2770_v14, %v2717_v56  ;;  %v584_v56 = vadd.f32 %v2770_v14, %v2724_v59  ;;  %v582_v59 = vadd.f32 %v2770_v14, %v2709_v52 }
 0x1ce   : > { %v2899_v3 = vpop.f32.mrf.mxu3 }
 0x1cf   : > { %v1187_v4 = vadd.f32 %v2809_v36, %v2899_v3  ;;  %v844_v51 = vsel %vm840_vm6, %v2925_v48, -inf }
 0x1d0   : > { %v739_v7 = vpop.f32.mrf.mxu1 }
 0x1d1   : > { %v1225_v10 = vand.u32 2147483647, %v1187_v4  ;;  %794 = vrot.lane.b32.xlu1 %v739_v7, %s2492_s19  ;;  %v580_v4 = vadd.f32 %v2770_v14, %v2689_v42 }
 0x1d3   : > { %2310 = vmatmul.msk.f32.gmra.mxu3 %vm1230_vm5, %v1225_v10 }
 0x1d6   : > { %v1300_v12 = vpop.f32.mrf.mxu3 }
 0x1d8   : > { %v742_v13 = vpop.f32.mrf.mxu1 }
 0x1d9   : > { %1364 = vrot.lane.b32.xlu1 %v1300_v12, %s2493_s28  ;;  %796 = vrot.lane.b32.xlu2 %v742_v13, %s2492_s19 }
 0x1de   : > { %v1303_v15 = vpop.f32.mrf.mxu3 }
 0x1df   : > { %1366 = vrot.lane.b32.xlu0 %v1303_v15, %s2493_s28 }
 0x1e0   : > { %v745_v17 = vpop.f32.mrf.mxu1 }
 0x1e6   : > { %v1306_v18 = vpop.f32.mrf.mxu3 }
 0x1e7   : > { %1368 = vrot.lane.b32.xlu2 %v1306_v18, %s2493_s28  ;;  %798 = vrot.lane.b32.xlu0 %v745_v17, %s2492_s19  ;;  %v581_v17 = vadd.f32 %v2770_v14, %v2697_v46 }
 0x1e8   : > { %v748_v36 = vpop.f32.mrf.mxu1 }
 0x1ee   : > { %v1309_v20 = vpop.f32.mrf.mxu3 }
 0x1ef   : > { %1370 = vrot.lane.b32.xlu0 %v1309_v20, %s2493_s28  ;;  %800 = vrot.lane.b32.xlu2 %v748_v36, %s2492_s19 }
 0x1f3   : > { %v781_v41 = vpop.permute.xlu2 %780 }
 0x1f4   : > { %v2937_v31 = vadd.f32 %v781_v41, %v579_v61  ;;  %v585_v41 = vadd.f32 %v2770_v14, %v2735_v63  ;;  %v587_v63 = vadd.f32 %v2770_v14, %v2752_v5 }
 0x1f6   : > { %v1312_v21 = vpop.f32.mrf.mxu3  ;;  %v847_v1 = vsel %vm840_vm6, %v2937_v31, -inf }
 0x1f7   : > { %1372 = vrot.lane.b32.xlu1 %v1312_v21, %s2493_s28 }
 0x1fb   : > { %v803_v26 = vpop.permute.xlu2 %802 }
 0x1fc   : > { %v2931_v55 = vadd.f32 %v803_v26, %v590_v54 }
 0x1fe   : > { %v1315_v22 = vpop.f32.mrf.mxu3  ;;  %v880_v58 = vsel %vm840_vm6, %v2931_v55, -inf }
 0x1ff   : > { %1374 = vrot.lane.b32.xlu2 %v1315_v22, %s2493_s28 }
 0x203   : > { %v805_v10 = vpop.permute.xlu2 %804 }
 0x204   : > { %v2950_v13 = vadd.f32 %v805_v10, %v591_v37 }
 0x206   : > { %v1318_v24 = vpop.f32.mrf.mxu3  ;;  %v883_v15 = vsel %vm840_vm6, %v2950_v13, -inf }
 0x207   : > { %1376 = vrot.lane.b32.xlu1 %v1318_v24, %s2493_s28 }
 0x20b   : > { %v785_v42 = vpop.permute.xlu2 %784 }
 0x20c   : > { %v2956_v36 = vadd.f32 %v785_v42, %v581_v17  ;;  %v1194_v42 = vadd.f32 %v2759_v8, %v2794_v28 }
 0x20e   : > { %v1321_v25 = vpop.f32.mrf.mxu3  ;;  %v853_v20 = vsel %vm840_vm6, %v2956_v36, -inf }
 0x20f   : > { %1378 = vrot.lane.b32.xlu1 %v1321_v25, %s2493_s28 }
 0x213   : > { %v783_v0 = vpop.permute.xlu0 %782  ;;  %v787_v46 = vpop.permute.xlu2 %786 }
 0x214   : > { %v2943_v35 = vadd.f32 %v783_v0, %v580_v4  ;;  %v2995_v10 = vadd.f32 %v787_v46, %v582_v59  ;;  %v1202_v59 = vadd.f32 %v2759_v8, %v2851_v11 }
 0x216   : > { %v1324_v39 = vpop.f32.mrf.mxu3  ;;  %v850_v12 = vsel %vm840_vm6, %v2943_v35, -inf }
 0x217   : > { %1380 = vrot.lane.b32.xlu2 %v1324_v39, %s2493_s28 }
 0x219   : > { %842 = vmax.xlane.f32.xlu0 %v841_v44 }
 0x21e   : > { %v1327_v7 = vpop.f32.mrf.mxu3 }
 0x221   : > { %845 = vmax.xlane.f32.xlu0 %v844_v51  ;;  %v807_v21 = vpop.permute.xlu0 %806 }
 0x222   : > { %v2963_v23 = vadd.f32 %v807_v21, %v592_v40 }
 0x223   : > { %v793_v49 = vpop.permute.xlu2 %792 }
 0x224   : > { %v886_v24 = vsel %vm840_vm6, %v2963_v23, -inf  ;;  %v2975_v44 = vadd.f32 %v793_v49, %v585_v41  ;;  %v586_v49 = vadd.f32 %v2770_v14, %v2745_v2  ;;  %v1195_v2 = vadd.f32 %v2759_v8, %v2799_v32 }
 0x226   : > { %v1330_v18 = vpop.f32.mrf.mxu3  ;;  %v865_v47 = vsel %vm840_vm6, %v2975_v44, -inf }
 0x229   : > { %881 = vmax.xlane.f32.xlu0 %v880_v58 }
 0x22b   : > { %v789_v25 = vpop.permute.xlu0 %788 }
 0x22c   : > { %v2969_v33 = vadd.f32 %v789_v25, %v583_v30 }
 0x22e   : > { %v1333_v22 = vpop.f32.mrf.mxu3  ;;  %v859_v39 = vsel %vm840_vm6, %v2969_v33, -inf }
 0x233   : > { %v791_v51 = vpop.permute.xlu1 %790  ;;  %v797_v61 = vpop.permute.xlu2 %796 }
 0x234   : > { %v2982_v26 = vadd.f32 %v791_v51, %v584_v56  ;;  %v2988_v0 = vadd.f32 %v797_v61, %v587_v63  ;;  %v1199_v56 = vadd.f32 %v2759_v8, %v2832_v57 }
 0x236   : > { %v862_v58 = vsel %vm840_vm6, %v2982_v26, -inf  ;;  %v871_v4 = vsel %vm840_vm6, %v2988_v0, -inf }
 0x239   : > { %848 = vmax.xlane.f32.xlu1 %v847_v1 }
 0x23d   : > { %1382 = vrot.lane.b32.xlu0 %v1327_v7, %s2493_s28 }
 0x23e   : > { %v1336_v54 = vpop.f32.mrf.mxu3 }
 0x240   : > { %851 = vmax.xlane.f32.xlu2 %v850_v12  ;;  %v856_v12 = vsel %vm840_vm6, %v2995_v10, -inf }
 0x243   : > { %v795_v5 = vpop.permute.xlu1 %794 }
 0x244   : > { %v3026_v51 = vadd.f32 %v795_v5, %v586_v49 }
 0x246   : > { %v1339_v1 = vpop.f32.mrf.mxu3 }
 0x248   : > { %884 = vmax.xlane.f32.xlu2 %v883_v15 }
 0x24b   : > { %v1365_v15 = vpop.permute.xlu1 %1364 }
 0x24c   : > { %v3002_v17 = vadd.f32 %v1365_v15, %v1194_v42 }
 0x24e   : > { %v1342_v7 = vpop.f32.mrf.mxu3  ;;  %v1429_v52 = vsel %vm1428_vm7, %v3002_v17, -inf }
 0x250   : > { %854 = vmax.xlane.f32.xlu2 %v853_v20  ;;  %v1196_v20 = vadd.f32 %v2759_v8, %v2804_v34  ;;  %v1198_v34 = vadd.f32 %v2759_v8, %v2824_v50 }
 0x251   : > { %v1367_v46 = vpop.permute.xlu0 %1366 }
 0x252   : > { %1386 = vrot.lane.b32.xlu1 %v1333_v22, %s2493_s28  ;;  %v589_v22 = vadd.f32 %v2770_v14, %v2662_v29  ;;  %v3038_v63 = vadd.f32 %v1367_v46, %v1195_v2 }
 0x254   : > { %v1432_v57 = vsel %vm1428_vm7, %v3038_v63, -inf }
 0x256   : > { %v1345_v37 = vpop.f32.mrf.mxu3 }
 0x258   : > { %887 = vmax.xlane.f32.xlu2 %v886_v24 }
 0x259   : > { %v799_v41 = vpop.permute.xlu0 %798 }
 0x267   : > { %860 = vmax.xlane.f32.xlu0 %v859_v39 }
 0x269   : > { %v1373_v30 = vpop.permute.xlu1 %1372 }
 0x26a   : > { %v3022_v39 = vadd.f32 %v1373_v30, %v1198_v34 }
 0x26c   : > { %v1441_v29 = vsel %vm1428_vm7, %v3022_v39, -inf }
 0x26f   : > { %866 = vmax.xlane.f32.xlu0 %v865_v47 }
 0x270   : > { %1384 = vrot.lane.b32.xlu2 %v1330_v18, %s2493_s28  ;;  %v1369_v18 = vpop.permute.xlu2 %1368 }
 0x271   : > { %v3010_v21 = vadd.f32 %v1369_v18, %v1196_v20 }
 0x273   : > { %v1435_v28 = vsel %vm1428_vm7, %v3010_v21, -inf }
 0x278   : > { %v801_v40 = vpop.permute.xlu2 %800 }
 0x279   : > { %v3016_v24 = vadd.f32 %v801_v40, %v589_v22  ;;  %v1200_v22 = vadd.f32 %v2759_v8, %v2839_v62 }
 0x27b   : > { %v877_v25 = vsel %vm840_vm6, %v3016_v24, -inf }
 0x27c   : > { %863 = vmax.xlane.f32.xlu1 %v862_v58  ;;  %v1377_v58 = vpop.permute.xlu1 %1376 }
 0x280   : > { %v1375_v47 = vpop.permute.xlu2 %1374 }
 0x281   : > { %v3034_v50 = vadd.f32 %v1375_v47, %v1199_v56 }
 0x283   : > { %1390 = vrot.lane.b32.xlu0 %v1339_v1, %s2493_s28  ;;  %v1371_v1 = vpop.permute.xlu0 %1370 }
 0x284   : > { %872 = vmax.xlane.f32.xlu1 %v871_v4  ;;  %v1444_v4 = vsel %vm1428_vm7, %v3034_v50, -inf  ;;  %v1379_v5 = vpop.permute.xlu1 %1378 }
 0x288   : > { %v1381_v61 = vpop.permute.xlu2 %1380 }
 0x28c   : > { %v843_v15 = vpop.xlane.xlu0 %842 }
 0x28d   : > { %v889_v42 = vsub.f32 %v2918_v38, %v843_v15 }
 0x299   : > { %857 = vmax.xlane.f32.xlu2 %v856_v12  ;;  %v3048_v12 = vadd.f32 %v1381_v61, %v1202_v59 }
 0x29d   : > { %1394 = vrot.lane.b32.xlu1 %v1345_v37, %s2493_s28 }
 0x2ac   : > { %v849_v11 = vpop.xlane.xlu1 %848 }
 0x2ad   : > { %1430 = vmax.xlane.f32.xlu0 %v1429_v52  ;;  %v1453_v52 = vsel %vm1428_vm7, %v3048_v12, -inf  ;;  %v891_v40 = vsub.f32 %v2937_v31, %v849_v11 }
 0x2af   : > { %v909_v30 = vmul.f32 1.442695, %v891_v40 }
 0x2b1   : > { %1388 = vrot.lane.b32.xlu2 %v1336_v54, %s2493_s28  ;;  %v868_v54 = vsel %vm840_vm6, %v3026_v51, -inf }
 0x2b3   : > { %v852_v32 = vpop.xlane.xlu2 %851 }
 0x2c1   : > { %1392 = vrot.lane.b32.xlu0 %v1342_v7, %s2493_s28  ;;  %v588_v7 = vadd.f32 %v2770_v14, %v2761_v9  ;;  %v1197_v9 = vadd.f32 %v2759_v8, %v2816_v43  ;;  %v905_v14 = vmul.f32 1.442695, %v889_v42  ;;  %v892_v42 = vsub.f32 %v2943_v35, %v852_v32 }
 0x2c3   : > { %v3050_v37 = vadd.f32 %v799_v41, %v588_v7  ;;  %v3059_v20 = vadd.f32 %v1371_v1, %v1197_v9  ;;  %2387 = vpow2.f32 %v905_v14  ;;  %v846_v41 = vpop.xlane.xlu0 %845 }
 0x2c4   : > { %v1387_v46 = vpop.permute.xlu1 %1386  ;;  %2389 = vpow2.f32 %v909_v30 }
 0x2c5   : > { %v874_v18 = vsel %vm840_vm6, %v3050_v37, -inf  ;;  %v1438_v38 = vsel %vm1428_vm7, %v3059_v20, -inf }
 0x2c7   : > { %1436 = vmax.xlane.f32.xlu1 %v1435_v28  ;;  %v3061_v28 = vpop.xlane.xlu2 %884 }
 0x2c9   : > { %v3070_v43 = vpop.eup %2387 }
 0x2ca   : > { %v3078_v56 = vpop.eup %2389 }
 0x2cb   : > { %v3104_v15 = vpop.xlane.xlu0 %881 }
 0x2cf   : > { %878 = vmax.xlane.f32.xlu1 %v877_v25  ;;  %v3068_v25 = vadd.f32 %v1377_v58, %v1200_v22  ;;  %v855_v34 = vpop.xlane.xlu2 %854 }
 0x2d0   : > { %v893_v31 = vsub.f32 %v2956_v36, %v855_v34 }
 0x2d1   : > { %v1447_v49 = vsel %vm1428_vm7, %v3068_v25, -inf }
 0x2d2   : > { %v913_v47 = vmul.f32 1.442695, %v893_v31 }
 0x2d3   : > { %v1383_v9 = vpop.permute.xlu0 %1382 }
 0x2d4   : > { %2391 = vpow2.f32 %v913_v47 }
 0x2d7   : > { %1442 = vmax.xlane.f32.xlu1 %v1441_v29  ;;  %v890_v29 = vsub.f32 %v2925_v48, %v846_v41  ;;  %v1209_v48 = vadd.f32 %v2759_v8, %v2899_v3  ;;  %v3102_v7 = vpop.xlane.xlu2 %887  ;;  %v1205_v3 = vadd.f32 %v2759_v8, %v2871_v27 }
 0x2da   : > { %869 = vmax.xlane.f32.xlu2 %v868_v54  ;;  %v907_v54 = vmul.f32 1.442695, %v890_v29  ;;  %v3084_v58 = vpop.eup %2391 }
 0x2dc   : > { %2393 = vpow2.f32 %v907_v54 }
 0x2df   : > { %1445 = vmax.xlane.f32.xlu1 %v1444_v4  ;;  %v1201_v4 = vadd.f32 %v2759_v8, %v2845_v6  ;;  %v1385_v6 = vpop.permute.xlu2 %1384 }
 0x2e2   : > { %1433 = vmax.xlane.f32.xlu2 %v1432_v57  ;;  %v3088_v36 = vpop.eup %2393  ;;  %v3098_v57 = vadd.f32 %v1379_v5, %v1201_v4  ;;  %v1203_v5 = vadd.f32 %v2759_v8, %v2858_v16  ;;  %v861_v16 = vpop.xlane.xlu0 %860 }
 0x2e3   : > { %v895_v4 = vsub.f32 %v2969_v33, %v861_v16 }
 0x2e4   : > { %v1450_v59 = vsel %vm1428_vm7, %v3098_v57, -inf  ;;  %v3115_v11 = vadd.f32 %v1383_v9, %v1203_v5 }
 0x2e5   : > { %v917_v9 = vmul.f32 1.442695, %v895_v4 }
 0x2e6   : > { %v1456_v27 = vsel %vm1428_vm7, %v3115_v11, -inf }
 0x2ea   : > { %1454 = vmax.xlane.f32.xlu2 %v1453_v52  ;;  %v3109_v52 = vadd.f32 %v1387_v46, %v1205_v3  ;;  %v867_v30 = vpop.xlane.xlu0 %866 }
 0x2eb   : > { %875 = vmax.xlane.f32.xlu0 %v874_v18  ;;  %v911_v18 = vmul.f32 1.442695, %v892_v42 }
 0x2ec   : > { %v1462_v14 = vsel %vm1428_vm7, %v3109_v52, -inf }
 0x2ed   : > { %2395 = vpow2.f32 %v911_v18 }
 0x2ef   : > { %v864_v62 = vpop.xlane.xlu1 %863 }
 0x2f0   : > { %v896_v40 = vsub.f32 %v2982_v26, %v864_v62  ;;  %v1204_v26 = vadd.f32 %v2759_v8, %v2863_v19  ;;  %v1207_v19 = vadd.f32 %v2759_v8, %v2887_v53  ;;  %v1208_v53 = vadd.f32 %v2759_v8, %v2893_v60 }
 0x2f2   : > { %v919_v46 = vmul.f32 1.442695, %v896_v40  ;;  %v3135_v62 = vadd.f32 %v1385_v6, %v1204_v26  ;;  %v897_v40 = vsub.f32 %v2975_v44, %v867_v30 }
 0x2f3   : > { %1439 = vmax.xlane.f32.xlu0 %v1438_v38  ;;  %v3119_v35 = vpop.eup %2395 }
 0x2f4   : > { %v1459_v47 = vsel %vm1428_vm7, %v3135_v62, -inf }
 0x2f5   : > { %v1391_v31 = vpop.permute.xlu0 %1390 }
 0x2f6   : > { %v3154_v18 = vadd.f32 %v1391_v31, %v1207_v19 }
 0x2f7   : > { %v3082_v2 = vpop.xlane.xlu1 %872 }
 0x2f8   : > { %953 = vrot.lane.b32.xlu1 %v3070_v43, %s2495_s16 }
 0x2fb   : > { %1448 = vmax.xlane.f32.xlu0 %v1447_v49 }
 0x302   : > { %957 = vrot.lane.b32.xlu2 %v3078_v56, %s2495_s16 }
 0x30a   : > { %961 = vrot.lane.b32.xlu2 %v3084_v58, %s2495_s16 }
 0x30c   : > { %v858_v38 = vpop.xlane.xlu2 %857 }
 0x30d   : > { %v894_v32 = vsub.f32 %v2995_v10, %v858_v38 }
 0x30f   : > { %955 = vrot.lane.b32.xlu0 %v3088_v36, %s2495_s16  ;;  %v1395_v61 = vpop.permute.xlu1 %1394  ;;  %v915_v22 = vmul.f32 1.442695, %v894_v32 }
 0x310   : > { %v3094_v1 = vadd.f32 %v1395_v61, %v1209_v48  ;;  %v1206_v61 = vadd.f32 %v2759_v8, %v2880_v45  ;;  %v1468_v45 = vsel %vm1428_vm7, %v3154_v18, -inf }
 0x311   : > { %2397 = vpow2.f32 %v915_v22  ;;  %v921_v22 = vmul.f32 1.442695, %v897_v40 }
 0x312   : > { %2399 = vpow2.f32 %v919_v46 }
 0x313   : > { %2401 = vpow2.f32 %v917_v9 }
 0x314   : > { %v1389_v48 = vpop.permute.xlu2 %1388 }
 0x317   : > { %v3125_v34 = vpop.eup %2397 }
 0x318   : > { %v3129_v49 = vpop.eup %2399 }
 0x319   : > { %v3167_v16 = vpop.eup %2401 }
 0x320   : > { %v1431_v10 = vpop.xlane.xlu0 %1430 }
 0x321   : > { %v1477_v46 = vsub.f32 %v3002_v17, %v1431_v10 }
 0x322   : > { %1451 = vmax.xlane.f32.xlu1 %v1450_v59  ;;  %v3146_v59 = vadd.f32 %v1389_v48, %v1206_v61 }
 0x323   : > { %v1493_v30 = vmul.f32 1.442695, %v1477_v46 }
 0x324   : > { %v1465_v6 = vsel %vm1428_vm7, %v3146_v59, -inf }
 0x333   : > { %1463 = vmax.xlane.f32.xlu2 %v1462_v14  ;;  %v1393_v41 = vpop.permute.xlu0 %1392 }
 0x334   : > { %v3163_v14 = vadd.f32 %v1393_v41, %v1208_v53  ;;  %v1528_v53 = vld [vmem:[%s3560_s9 + $0x18] sm:$0xff] }
 0x335   : > { %1621 = vmatpush.msrb.mxu1 %v1528_v53 }
 0x339   : > { %1457 = vmax.xlane.f32.xlu0 %v1456_v27 }
 0x33a   : > { %v3139_v29 = vpop.xlane.xlu1 %1436 }
 0x33b   : > { %959 = vrot.lane.b32.xlu1 %v3119_v35, %s2495_s16 }
 0x342   : > { %v3150_v3 = vpop.xlane.xlu1 %878 }
 0x34a   : > { %v1443_v27 = vpop.xlane.xlu1 %1442 }
 0x34b   : > { %963 = vrot.lane.b32.xlu2 %v3125_v34, %s2495_s16  ;;  %v1481_v61 = vsub.f32 %v3022_v39, %v1443_v27  ;;  %v1474_v39 = vsel %vm1428_vm7, %v3094_v1, -inf }
 0x34d   : > { %967 = vrot.lane.b32.xlu0 %v3129_v49, %s2495_s16  ;;  %v870_v5 = vpop.xlane.xlu2 %869 }
 0x34e   : > { %v898_v33 = vsub.f32 %v3026_v51, %v870_v5  ;;  %v1471_v51 = vsel %vm1428_vm7, %v3163_v14, -inf }
 0x350   : > { %v923_v38 = vmul.f32 1.442695, %v898_v33  ;;  %v899_v33 = vsub.f32 %v2988_v0, %v3082_v2  ;;  %v1479_v0 = vsub.f32 %v3010_v21, %v3139_v29  ;;  %v901_v21 = vsub.f32 %v3016_v24, %v3150_v3  ;;  %v1527_v29 = vld [vmem:[%s3560_s9 + $0x10] sm:$0xff]  ;;  %v1525_v24 = vld [vmem:[%s3560_s9] sm:$0xff] }
 0x351   : > { %1622 = vmatpush.msrb.mxu1 %v1527_v29 }
 0x352   : > { %2403 = vpow2.f32 %v923_v38  ;;  %v3177_v31 = vpop.xlane.xlu1 %1445  ;;  %v925_v27 = vmul.f32 1.442695, %v899_v33 }
 0x353   : > { %2405 = vpow2.f32 %v921_v22 }
 0x354   : > { %2407 = vpow2.f32 %v1493_v30 }
 0x355   : > { %v1434_v26 = vpop.xlane.xlu2 %1433 }
 0x358   : > { %v3174_v60 = vpop.eup %2403 }
 0x359   : > { %v3182_v41 = vpop.eup %2405 }
 0x35a   : > { %v3187_v48 = vpop.eup %2407 }
 0x35e   : > { %v3141_v54 = vpop.xlane.xlu0 %875 }
 0x35f   : > { %v900_v38 = vsub.f32 %v3050_v37, %v3141_v54  ;;  %v1497_v54 = vmul.f32 1.442695, %v1479_v0 }
 0x365   : > { %1460 = vmax.xlane.f32.xlu1 %v1459_v47  ;;  %v1478_v47 = vsub.f32 %v3038_v63, %v1434_v26 }
 0x366   : > { %v3152_v42 = vpop.xlane.xlu0 %1439 }
 0x367   : > { %v1495_v10 = vmul.f32 1.442695, %v1478_v47 }
 0x369   : > { %2409 = vpow2.f32 %v1495_v10  ;;  %v1526_v10 = vld [vmem:[%s3560_s9 + $0x8] sm:$0xff] }
 0x36a   : > { %v954_v17 = vpop.permute.xlu1 %953  ;;  %1623 = vmatpush.msrb.mxu1 %v1526_v10  ;;  %v902_v10 = vsub.f32 %v2931_v55, %v3104_v15 }
 0x36b   : > { %v1002_v46 = vsel %vm1001_vm8, %v954_v17, 0.0 }
 0x36c   : > { %1624 = vmatpush.msrb.mxu1 %v1525_v24 }
 0x36e   : > { %v3165_v32 = vpop.xlane.xlu0 %1448 }
 0x36f   : > { %v3193_v5 = vpop.eup %2409 }
 0x374   : > { %1466 = vmax.xlane.f32.xlu2 %v1465_v6  ;;  %v1501_v6 = vmul.f32 1.442695, %v1481_v61  ;;  %v1483_v61 = vsub.f32 %v3068_v25, %v3165_v32 }
 0x377   : > { %1469 = vmax.xlane.f32.xlu0 %v1468_v45 }
 0x37e   : > { %965 = vrot.lane.b32.xlu1 %v3167_v16, %s2495_s16 }
 0x37f   : > { %1472 = vmax.xlane.f32.xlu0 %v1471_v51  ;;  %v927_v51 = vmul.f32 1.442695, %v900_v38 }
 0x381   : > { %v956_v8 = vpop.permute.xlu0 %955 }
 0x382   : > { %v1005_v44 = vsel %vm1001_vm8, %v956_v8, 0.0 }
 0x386   : > { %971 = vrot.lane.b32.xlu1 %v3174_v60, %s2495_s16 }
 0x387   : > { %1006 = vadd.xlane.f32.xlu0 %v1005_v44 }
 0x38c   : > { %969 = vrot.lane.b32.xlu2 %v3182_v41, %s2495_s16 }
 0x394   : > { %1545 = vrot.lane.b32.xlu2 %v3187_v48, %s2496_s17 }
 0x395   : > { %v1452_v4 = vpop.xlane.xlu1 %1451 }
 0x396   : > { %v1484_v19 = vsub.f32 %v3098_v57, %v1452_v4  ;;  %v3207_v57 = vpop.xlane.xlu2 %1454  ;;  %v1480_v4 = vsub.f32 %v3059_v20, %v3152_v42 }
 0x398   : > { %v1507_v9 = vmul.f32 1.442695, %v1484_v19  ;;  %v1505_v19 = vmul.f32 1.442695, %v1483_v61  ;;  %v1499_v25 = vmul.f32 1.442695, %v1480_v4 }
 0x399   : > { %v931_v61 = vmul.f32 1.442695, %v902_v10 }
 0x39a   : > { %2411 = vpow2.f32 %v1507_v9 }
 0x39b   : > { %2413 = vpow2.f32 %v1501_v6 }
 0x39c   : > { %1547 = vrot.lane.b32.xlu2 %v3193_v5, %s2496_s17  ;;  %2415 = vpow2.f32 %v925_v27 }
 0x39d   : > { %2417 = vpow2.f32 %v927_v51 }
 0x39e   : > { %v3216_v40 = vpop.permute.xlu2 %957  ;;  %2419 = vpow2.f32 %v1497_v54 }
 0x3a0   : > { %v3197_v63 = vpop.eup %2411 }
 0x3a1   : > { %1559 = vrot.lane.b32.xlu0 %v3197_v63, %s2496_s17  ;;  %v3201_v45 = vpop.eup %2413 }
 0x3a2   : > { %v3218_v8 = vpop.eup %2415 }
 0x3a3   : > { %v3226_v30 = vpop.eup %2417 }
 0x3a4   : > { %1553 = vrot.lane.b32.xlu2 %v3201_v45, %s2496_s17  ;;  %v3246_v3 = vpop.eup %2419 }
 0x3a6   : > { %v962_v44 = vpop.permute.xlu2 %961 }
 0x3ac   : > { %v1458_v37 = vpop.xlane.xlu0 %1457 }
 0x3ad   : > { %v960_v22 = vpop.permute.xlu1 %959  ;;  %v1486_v26 = vsub.f32 %v3115_v11, %v1458_v37  ;;  %v929_v11 = vmul.f32 1.442695, %v901_v21  ;;  %v1008_v21 = vsel %vm1001_vm8, %v3216_v40, 0.0 }
 0x3ae   : > { %v1011_v2 = vsel %vm1001_vm8, %v960_v22, 0.0  ;;  %v3236_v17 = vpop.xlane.xlu2 %1463  ;;  %v1014_v22 = vsel %vm1001_vm8, %v962_v44, 0.0 }
 0x3af   : > { %v1511_v47 = vmul.f32 1.442695, %v1486_v26  ;;  %v1488_v4 = vsub.f32 %v3109_v52, %v3236_v17  ;;  %v903_v52 = vsub.f32 %v2950_v13, %v3061_v28 }
 0x3b0   : > { %1475 = vmax.xlane.f32.xlu1 %v1474_v39  ;;  %v1482_v39 = vsub.f32 %v3034_v50, %v3177_v31 }
 0x3b1   : > { %2421 = vpow2.f32 %v1511_v47  ;;  %v933_v17 = vmul.f32 1.442695, %v903_v52 }
 0x3b2   : > { %2423 = vpow2.f32 %v929_v11  ;;  %v1503_v42 = vmul.f32 1.442695, %v1482_v39 }
 0x3b3   : > { %2425 = vpow2.f32 %v1505_v19 }
 0x3b4   : > { %2427 = vpow2.f32 %v1499_v25 }
 0x3b5   : > { %2429 = vpow2.f32 %v1503_v42 }
 0x3b6   : > { %v3254_v32 = vpop.permute.xlu2 %963 }
 0x3b7   : > { %v3252_v9 = vpop.eup %2421 }
 0x3b8   : > { %v3258_v6 = vpop.eup %2423 }
 0x3b9   : > { %v3264_v20 = vpop.eup %2425 }
 0x3ba   : > { %v3268_v53 = vpop.eup %2427 }
 0x3bb   : > { %v3274_v38 = vpop.eup %2429 }
 0x3bf   : > { %v968_v37 = vpop.permute.xlu0 %967 }
 0x3c0   : > { %v1023_v26 = vsel %vm1001_vm8, %v968_v37, 0.0 }
 0x3c9   : > { %973 = vrot.lane.b32.xlu1 %v3218_v8, %s2495_s16 }
 0x3cb   : > { %1012 = vadd.xlane.f32.xlu0 %v1011_v2 }
 0x3cd   : > { %1003 = vadd.xlane.f32.xlu2 %v1002_v46 }
 0x3d1   : > { %975 = vrot.lane.b32.xlu1 %v3226_v30, %s2495_s16 }
 0x3d8   : > { %v1461_v51 = vpop.xlane.xlu1 %1460 }
 0x3d9   : > { %1549 = vrot.lane.b32.xlu1 %v3246_v3, %s2496_s17  ;;  %v1487_v46 = vsub.f32 %v3135_v62, %v1461_v51  ;;  %v1485_v62 = vsub.f32 %v3048_v12, %v3207_v57  ;;  %v904_v12 = vsub.f32 %v2963_v23, %v3102_v7 }
 0x3db   : > { %v1513_v54 = vmul.f32 1.442695, %v1487_v46  ;;  %v1509_v11 = vmul.f32 1.442695, %v1485_v62  ;;  %v935_v55 = vmul.f32 1.442695, %v904_v12 }
 0x3dd   : > { %2431 = vpow2.f32 %v1513_v54 }
 0x3df   : > { %1563 = vrot.lane.b32.xlu0 %v3252_v9, %s2496_s17 }
 0x3e1   : > { %977 = vrot.lane.b32.xlu1 %v3258_v6, %s2495_s16 }
 0x3e3   : > { %v3286_v29 = vpop.eup %2431 }
 0x3e5   : > { %1557 = vrot.lane.b32.xlu2 %v3264_v20, %s2496_s17 }
 0x3e7   : > { %v1467_v33 = vpop.xlane.xlu2 %1466 }
 0x3e8   : > { %v1489_v44 = vsub.f32 %v3146_v59, %v1467_v33  ;;  %v1515_v59 = vmul.f32 1.442695, %v1488_v4 }
 0x3e9   : > { %1551 = vrot.lane.b32.xlu1 %v3268_v53, %s2496_s17 }
 0x3ea   : > { %v1517_v47 = vmul.f32 1.442695, %v1489_v44  ;;  %v1470_v23 = vpop.xlane.xlu0 %1469 }
 0x3eb   : > { %v1490_v42 = vsub.f32 %v3154_v18, %v1470_v23 }
 0x3ec   : > { %2433 = vpow2.f32 %v1517_v47 }
 0x3ed   : > { %2435 = vpow2.f32 %v1509_v11  ;;  %v1519_v13 = vmul.f32 1.442695, %v1490_v42 }
 0x3ee   : > { %2437 = vpow2.f32 %v931_v61 }
 0x3ef   : > { %v3272_v27 = vpop.permute.xlu2 %969  ;;  %2439 = vpow2.f32 %v1515_v59 }
 0x3f0   : > { %v966_v0 = vpop.permute.xlu1 %965  ;;  %2441 = vpow2.f32 %v935_v55  ;;  %v1026_v18 = vsel %vm1001_vm8, %v3272_v27, 0.0 }
 0x3f1   : > { %1555 = vrot.lane.b32.xlu1 %v3274_v38, %s2496_s17  ;;  %v1020_v2 = vsel %vm1001_vm8, %v966_v0, 0.0  ;;  %2443 = vpow2.f32 %v933_v17 }
 0x3f2   : > { %v3295_v40 = vpop.eup %2433  ;;  %2445 = vpow2.f32 %v1519_v13  ;;  %v1473_v27 = vpop.xlane.xlu0 %1472 }
 0x3f3   : > { %v3303_v57 = vpop.eup %2435  ;;  %v1491_v10 = vsub.f32 %v3163_v14, %v1473_v27 }
 0x3f4   : > { %v3307_v19 = vpop.eup %2437 }
 0x3f5   : > { %v3313_v7 = vpop.eup %2439  ;;  %v1521_v11 = vmul.f32 1.442695, %v1491_v10 }
 0x3f6   : > { %v3317_v39 = vpop.eup %2441 }
 0x3f7   : > { %v1546_v50 = vpop.permute.xlu2 %1545  ;;  %v3322_v28 = vpop.eup %2443 }
 0x3f8   : > { %2311 = vmatmul.msk.f32.vlgmr.msrb.gmra.mxu1 %vm1054_vm1, %v1546_v50  ;;  %v972_v24 = vpop.permute.xlu1 %971  ;;  %v1017_v50 = vsel %vm1001_vm8, %v3254_v32, 0.0 }
 0x3f9   : > { %v1029_v47 = vsel %vm1001_vm8, %v972_v24, 0.0 }
 0x3ff   : > { %v1548_v31 = vpop.permute.xlu2 %1547 }
 0x400   : > { %2312 = vmatmul.msk.f32.gmra.mxu1 %vm1054_vm1, %v1548_v31  ;;  %v3328_v31 = vpop.eup %2445 }
 0x407   : > { %v1554_v32 = vpop.permute.xlu2 %1553 }
 0x409   : > { %1015 = vadd.xlane.f32.xlu0 %v1014_v22 }
 0x40e   : > { %1021 = vadd.xlane.f32.xlu2 %v1020_v2 }
 0x416   : > { %1024 = vadd.xlane.f32.xlu2 %v1023_v26 }
 0x41b   : > { %1009 = vadd.xlane.f32.xlu1 %v1008_v21 }
 0x41d   : > { %1565 = vrot.lane.b32.xlu0 %v3286_v29, %s2496_s17 }
 0x423   : > { %v1476_v15 = vpop.xlane.xlu1 %1475 }
 0x424   : > { %v1492_v0 = vsub.f32 %v3094_v1, %v1476_v15  ;;  %v1007_v1 = vpop.xlane.xlu0 %1006 }
 0x426   : > { %v1523_v2 = vmul.f32 1.442695, %v1492_v0 }
 0x428   : > { %2447 = vpow2.f32 %v1523_v2 }
 0x429   : > { %2449 = vpow2.f32 %v1521_v11 }
 0x42c   : > { %v1560_v62 = vpop.permute.xlu0 %1559 }
 0x42e   : > { %1569 = vrot.lane.b32.xlu2 %v3295_v40, %s2496_s17  ;;  %v3337_v37 = vpop.eup %2447 }
 0x42f   : > { %v3349_v4 = vpop.eup %2449 }
 0x434   : > { %1561 = vrot.lane.b32.xlu1 %v3303_v57, %s2496_s17 }
 0x436   : > { %979 = vrot.lane.b32.xlu2 %v3307_v19, %s2495_s16 }
 0x43b   : > { %v974_v25 = vpop.permute.xlu1 %973 }
 0x43c   : > { %1567 = vrot.lane.b32.xlu1 %v3313_v7, %s2496_s17  ;;  %v1032_v54 = vsel %vm1001_vm8, %v974_v25, 0.0 }
 0x43e   : > { %983 = vrot.lane.b32.xlu2 %v3317_v39, %s2495_s16  ;;  %v1013_v24 = vpop.xlane.xlu0 %1012 }
 0x440   : > { %v1004_v26 = vpop.xlane.xlu2 %1003 }
 0x443   : > { %v976_v33 = vpop.permute.xlu1 %975 }
 0x444   : > { %981 = vrot.lane.b32.xlu1 %v3322_v28, %s2495_s16  ;;  %v1035_v42 = vsel %vm1001_vm8, %v976_v33, 0.0 }
 0x447   : > { %1018 = vadd.xlane.f32.xlu0 %v1017_v50 }
 0x448   : > { %v1558_v44 = vpop.permute.xlu2 %1557 }
 0x44b   : > { %v1550_v51 = vpop.permute.xlu1 %1549 }
 0x44c   : > { %1571 = vrot.lane.b32.xlu1 %v3328_v31, %s2496_s17  ;;  %2313 = vmatmul.msk.f32.gmra.mxu1 %vm1054_vm1, %v1550_v51 }
 0x44f   : > { %1027 = vadd.xlane.f32.xlu0 %v1026_v18 }
 0x451   : > { %v1564_v52 = vpop.permute.xlu0 %1563 }
 0x453   : > { %v978_v22 = vpop.permute.xlu1 %977 }
 0x454   : > { %v1038_v61 = vsel %vm1001_vm8, %v978_v22, 0.0 }
 0x45b   : > { %v1552_v46 = vpop.permute.xlu1 %1551 }
 0x45c   : > { %2314 = vmatmul.msk.f32.gmra.mxu1 %vm1054_vm1, %v1552_v46 }
 0x463   : > { %1575 = vrot.lane.b32.xlu0 %v3337_v37, %s2496_s17  ;;  %v1556_v21 = vpop.permute.xlu1 %1555 }
 0x464   : > { %2315 = vmatmul.msk.f32.gmra.mxu1 %vm1054_vm1, %v1554_v32 }
 0x467   : > { %1033 = vadd.xlane.f32.xlu2 %v1032_v54 }
 0x46c   : > { %2316 = vmatmul.msk.f32.gmra.mxu1 %vm1054_vm1, %v1556_v21 }
 0x474   : > { %2317 = vmatmul.msk.f32.gmra.mxu1 %vm1054_vm1, %v1558_v44 }
 0x475   : > { %v1626_v12 = vpop.f32.mrf.mxu1 }
 0x476   : > { %1030 = vadd.xlane.f32.xlu1 %v1029_v47  ;;  %v1674_v59 = vmul.f32 %v1626_v12, %v1004_v26 }
 0x478   : > { %2451 = vrcp.f32 %v1674_v59 }
 0x47c   : > { %2318 = vmatmul.msk.f32.gmra.mxu1 %vm1054_vm1, %v1560_v62  ;;  %v1016_v17 = vpop.xlane.xlu0 %1015 }
 0x47d   : > { %v1629_v51 = vpop.f32.mrf.mxu1 }
 0x47e   : > { %v2452_v15 = vpop.eup %2451  ;;  %v1675_v0 = vmul.f32 %v1629_v51, %v1007_v1 }
 0x480   : > { %2453 = vrcp.f32 %v1675_v0 }
 0x481   : > { %v1022_v23 = vpop.xlane.xlu2 %1021 }
 0x486   : > { %v2454_v54 = vpop.eup %2453 }
 0x489   : > { %v1025_v50 = vpop.xlane.xlu2 %1024 }
 0x48d   : > { %1039 = vadd.xlane.f32.xlu0 %v1038_v61 }
 0x48e   : > { %v1010_v55 = vpop.xlane.xlu1 %1009 }
 0x48f   : > { %1573 = vrot.lane.b32.xlu1 %v3349_v4, %s2496_s17  ;;  %v1566_v25 = vpop.permute.xlu0 %1565 }
 0x491   : > { %v1570_v22 = vpop.permute.xlu2 %1569 }
 0x4a1   : > { %1722 = vrot.lane.b32.xlu0 %v2452_v15, %s2492_s19 }
 0x4a6   : > { %v1562_v14 = vpop.permute.xlu1 %1561 }
 0x4a7   : > { %2319 = vmatmul.msk.f32.gmra.mxu1 %vm1054_vm1, %v1562_v14 }
 0x4ae   : > { %v1568_v13 = vpop.permute.xlu1 %1567 }
 0x4af   : > { %2320 = vmatmul.msk.f32.gmra.mxu1 %vm1054_vm1, %v1564_v52 }
 0x4b6   : > { %v982_v18 = vpop.permute.xlu1 %981 }
 0x4b7   : > { %2321 = vmatmul.msk.f32.gmra.mxu1 %vm1054_vm1, %v1566_v25 }
 0x4b9   : > { %1036 = vadd.xlane.f32.xlu1 %v1035_v42 }
 0x4ba   : > { %v1019_v47 = vpop.xlane.xlu0 %1018 }
 0x4be   : > { %v1572_v46 = vpop.permute.xlu1 %1571 }
 0x4bf   : > { %2322 = vmatmul.msk.f32.gmra.mxu1 %vm1054_vm1, %v1568_v13  ;;  %v980_v13 = vpop.permute.xlu2 %979 }
 0x4c0   : > { %v1041_v51 = vsel %vm1001_vm8, %v980_v13, 0.0 }
 0x4c2   : > { %v1028_v14 = vpop.xlane.xlu0 %1027 }
 0x4c7   : > { %2323 = vmatmul.msk.f32.gmra.mxu1 %vm1054_vm1, %v1570_v22 }
 0x4c9   : > { %v1632_v2 = vpop.f32.mrf.mxu1 }
 0x4ca   : > { %v1676_v32 = vmul.f32 %v1632_v2, %v1010_v55 }
 0x4cc   : > { %2455 = vrcp.f32 %v1676_v32  ;;  %v984_v32 = vpop.permute.xlu2 %983 }
 0x4cf   : > { %2324 = vmatmul.msk.f32.gmra.mxu1 %vm1054_vm1, %v1572_v46 }
 0x4d2   : > { %1724 = vrot.lane.b32.xlu1 %v2454_v54, %s2492_s19  ;;  %v2456_v33 = vpop.eup %2455 }
 0x4d5   : > { %v1576_v42 = vpop.permute.xlu0 %1575 }
 0x4d9   : > { %v1635_v27 = vpop.f32.mrf.mxu1 }
 0x4da   : > { %v1677_v26 = vmul.f32 %v1635_v27, %v1013_v24  ;;  %1726 = vrot.lane.b32.xlu1 %v2456_v33, %s2492_s19 }
 0x4dc   : > { %2457 = vrcp.f32 %v1677_v26  ;;  %v1034_v26 = vpop.xlane.xlu2 %1033 }
 0x4e1   : > { %v1638_v21 = vpop.f32.mrf.mxu1 }
 0x4e2   : > { %v2458_v1 = vpop.eup %2457  ;;  %v1678_v44 = vmul.f32 %v1638_v21, %v1016_v17 }
 0x4e3   : > { %1728 = vrot.lane.b32.xlu2 %v2458_v1, %s2492_s19 }
 0x4e4   : > { %2459 = vrcp.f32 %v1678_v44 }
 0x4e9   : > { %v1641_v62 = vpop.f32.mrf.mxu1  ;;  %v1031_v24 = vpop.xlane.xlu1 %1030 }
 0x4ea   : > { %v2460_v10 = vpop.eup %2459  ;;  %v1679_v11 = vmul.f32 %v1641_v62, %v1019_v47 }
 0x4eb   : > { %1730 = vrot.lane.b32.xlu0 %v2460_v10, %s2492_s19  ;;  %v1786_v10 = vld [vmem:[%s3561_s10] sm:$0xf] }
 0x4ec   : > { %2461 = vrcp.f32 %v1679_v11  ;;  %2327 = vmatpush.msk.msrb.mxu0 %vm1279_vm4, %v1786_v10 }
 0x4f1   : > { %v1644_v61 = vpop.f32.mrf.mxu1 }
 0x4f2   : > { %v2462_v12 = vpop.eup %2461  ;;  %v1680_v59 = vmul.f32 %v1644_v61, %v1022_v23  ;;  %v1044_v23 = vsel %vm1001_vm8, %v982_v18, 0.0 }
 0x4f3   : > { %1732 = vrot.lane.b32.xlu0 %v2462_v12, %s2492_s19 }
 0x4f4   : > { %2463 = vrcp.f32 %v1680_v59 }
 0x4f9   : > { %v1647_v55 = vpop.f32.mrf.mxu1 }
 0x4fa   : > { %v2464_v15 = vpop.eup %2463  ;;  %v1681_v52 = vmul.f32 %v1647_v55, %v1025_v50 }
 0x4fb   : > { %1734 = vrot.lane.b32.xlu2 %v2464_v15, %s2492_s19 }
 0x4fc   : > { %2465 = vrcp.f32 %v1681_v52 }
 0x500   : > { %v1040_v0 = vpop.xlane.xlu0 %1039 }
 0x501   : > { %v1574_v17 = vpop.permute.xlu1 %1573 }
 0x502   : > { %v2466_v25 = vpop.eup %2465  ;;  %2325 = vmatmul.msk.f32.gmra.mxu1 %vm1054_vm1, %v1574_v17 }
 0x503   : > { %1736 = vrot.lane.b32.xlu1 %v2466_v25, %s2492_s19 }
 0x50a   : > { %2326 = vmatmul.msk.f32.gmra.mxu1 %vm1054_vm1, %v1576_v42  ;;  %v1047_v42 = vsel %vm1001_vm8, %v984_v32, 0.0 }
 0x513   : > { %v1723_v33 = vpop.permute.xlu0 %1722 }
 0x514   : > { %v1770_v27 = vmul.f32 %v3070_v43, %v1723_v33 }
 0x51d   : > { %1045 = vadd.xlane.f32.xlu0 %v1044_v23 }
 0x524   : > { %v1650_v50 = vpop.f32.mrf.mxu1  ;;  %1042 = vadd.xlane.f32.xlu2 %v1041_v51 }
 0x525   : > { %v1682_v22 = vmul.f32 %v1650_v50, %v1028_v14 }
 0x527   : > { %2467 = vrcp.f32 %v1682_v22 }
 0x52c   : > { %v1653_v2 = vpop.f32.mrf.mxu1  ;;  %v1037_v1 = vpop.xlane.xlu1 %1036 }
 0x52d   : > { %v2468_v46 = vpop.eup %2467  ;;  %v1683_v54 = vmul.f32 %v1653_v2, %v1031_v24 }
 0x52e   : > { %1738 = vrot.lane.b32.xlu1 %v2468_v46, %s2492_s19 }
 0x52f   : > { %2469 = vrcp.f32 %v1683_v54 }
 0x534   : > { %v1656_v21 = vpop.f32.mrf.mxu1 }
 0x535   : > { %v2470_v18 = vpop.eup %2469  ;;  %v1684_v44 = vmul.f32 %v1656_v21, %v1034_v26 }
 0x536   : > { %1740 = vrot.lane.b32.xlu0 %v2470_v18, %s2492_s19  ;;  %1803 = vrot.lane.b32.xlu1 %v1770_v27, %s2495_s16 }
 0x537   : > { %2471 = vrcp.f32 %v1684_v44 }
 0x53c   : > { %v1659_v55 = vpop.f32.mrf.mxu1 }
 0x53d   : > { %v1729_v47 = vpop.permute.xlu2 %1728  ;;  %v2472_v61 = vpop.eup %2471  ;;  %v1685_v52 = vmul.f32 %v1659_v55, %v1037_v1 }
 0x53e   : > { %v1773_v62 = vmul.f32 %v3119_v35, %v1729_v47 }
 0x53f   : > { %2473 = vrcp.f32 %v1685_v52 }
 0x540   : > { %1809 = vrot.lane.b32.xlu0 %v1773_v62, %s2495_s16 }
 0x544   : > { %v1725_v43 = vpop.permute.xlu1 %1724  ;;  %v1662_v23 = vpop.f32.mrf.mxu1 }
 0x545   : > { %v1771_v11 = vmul.f32 %v3088_v36, %v1725_v43 }
 0x547   : > { %1805 = vrot.lane.b32.xlu1 %v1771_v11, %s2495_s16 }
 0x548   : > { %1742 = vrot.lane.b32.xlu0 %v2472_v61, %s2492_s19 }
 0x54c   : > { %v1727_v12 = vpop.permute.xlu1 %1726  ;;  %v1665_v13 = vpop.f32.mrf.mxu1 }
 0x54d   : > { %v1772_v35 = vmul.f32 %v3078_v56, %v1727_v12  ;;  %v2474_v56 = vpop.eup %2473 }
 0x54f   : > { %1807 = vrot.lane.b32.xlu1 %v1772_v35, %s2495_s16 }
 0x555   : > { %v1735_v15 = vpop.permute.xlu2 %1734 }
 0x556   : > { %v1776_v36 = vmul.f32 %v3167_v16, %v1735_v15  ;;  %v1686_v16 = vmul.f32 %v1662_v23, %v1040_v0 }
 0x558   : > { %2475 = vrcp.f32 %v1686_v16 }
 0x55d   : > { %v1731_v59 = vpop.permute.xlu0 %1730 }
 0x55e   : > { %v1774_v24 = vmul.f32 %v3084_v58, %v1731_v59 }
 0x560   : > { %1811 = vrot.lane.b32.xlu2 %v1774_v24, %s2495_s16 }
 0x565   : > { %v1733_v14 = vpop.permute.xlu0 %1732 }
 0x566   : > { %v1775_v17 = vmul.f32 %v3125_v34, %v1733_v14  ;;  %v2476_v34 = vpop.eup %2475 }
 0x568   : > { %1813 = vrot.lane.b32.xlu0 %v1775_v17, %s2495_s16  ;;  %1815 = vrot.lane.b32.xlu2 %v1776_v36, %s2495_s16 }
 0x570   : > { %1744 = vrot.lane.b32.xlu0 %v2474_v56, %s2492_s19 }
 0x575   : > { %v1737_v25 = vpop.permute.xlu1 %1736 }
 0x576   : > { %v1777_v58 = vmul.f32 %v3129_v49, %v1737_v25 }
 0x578   : > { %1817 = vrot.lane.b32.xlu0 %v1777_v58, %s2495_s16 }
 0x579   : > { %1048 = vadd.xlane.f32.xlu1 %v1047_v42 }
 0x57f   : > { %v1668_v2 = vpop.f32.mrf.mxu1 }
 0x587   : > { %v1671_v11 = vpop.f32.mrf.mxu1 }
 0x590   : > { %v1046_v22 = vpop.xlane.xlu0 %1045 }
 0x591   : > { %v1688_v46 = vmul.f32 %v1668_v2, %v1046_v22 }
 0x592   : > { %1746 = vrot.lane.b32.xlu1 %v2476_v34, %s2492_s19 }
 0x597   : > { %v1043_v51 = vpop.xlane.xlu2 %1042 }
 0x598   : > { %v1687_v50 = vmul.f32 %v1665_v13, %v1043_v51 }
 0x59a   : > { %2477 = vrcp.f32 %v1687_v50 }
 0x59b   : > { %2479 = vrcp.f32 %v1688_v46 }
 0x5a0   : > { %v2478_v54 = vpop.eup %2477  ;;  %v1739_v49 = vpop.permute.xlu1 %1738 }
 0x5a1   : > { %v1778_v32 = vmul.f32 %v3182_v41, %v1739_v49  ;;  %1748 = vrot.lane.b32.xlu2 %v2478_v54, %s2492_s19  ;;  %v2480_v0 = vpop.eup %2479 }
 0x5a3   : > { %1819 = vrot.lane.b32.xlu0 %v1778_v32, %s2495_s16 }
 0x5a8   : > { %v1741_v33 = vpop.permute.xlu0 %1740  ;;  %v1804_v27 = vpop.permute.xlu1 %1803 }
 0x5a9   : > { %v1779_v18 = vmul.f32 %v3174_v60, %v1741_v33  ;;  %2328 = vmatmul.msk.f32.vlgmr.msrb.gmra.mxu0 %vm1001_vm8, %v1804_v27  ;;  %1750 = vrot.lane.b32.xlu2 %v2480_v0, %s2492_s19 }
 0x5ab   : > { %1821 = vrot.lane.b32.xlu0 %v1779_v18, %s2495_s16 }
 0x5b2   : > { %v1810_v26 = vpop.permute.xlu0 %1809 }
 0x5b9   : > { %v1806_v21 = vpop.permute.xlu1 %1805 }
 0x5ba   : > { %2329 = vmatmul.msk.f32.gmra.mxu0 %vm1001_vm8, %v1806_v21  ;;  %v1743_v41 = vpop.permute.xlu0 %1742  ;;  %v1812_v60 = vpop.permute.xlu2 %1811 }
 0x5bb   : > { %v1780_v1 = vmul.f32 %v3218_v8, %v1743_v41 }
 0x5bd   : > { %1823 = vrot.lane.b32.xlu1 %v1780_v1, %s2495_s16 }
 0x5c1   : > { %v1808_v44 = vpop.permute.xlu1 %1807 }
 0x5c2   : > { %2330 = vmatmul.msk.f32.gmra.mxu0 %vm1001_vm8, %v1808_v44  ;;  %v1816_v62 = vpop.permute.xlu2 %1815 }
 0x5ca   : > { %2331 = vmatmul.msk.f32.gmra.mxu0 %vm1001_vm8, %v1810_v26 }
 0x5d2   : > { %2332 = vmatmul.msk.f32.gmra.mxu0 %vm1001_vm8, %v1812_v60 }
 0x5da   : > { %v1814_v47 = vpop.permute.xlu0 %1813 }
 0x5db   : > { %2333 = vmatmul.msk.f32.gmra.mxu0 %vm1001_vm8, %v1814_v47  ;;  %v2015_v47 = vld [vmem:[%s3562_s11] sm:$0xff] }
 0x5e2   : > { %v1745_v10 = vpop.permute.xlu0 %1744 }
 0x5e3   : > { %v1781_v43 = vmul.f32 %v3226_v30, %v1745_v10  ;;  %2334 = vmatmul.msk.f32.gmra.mxu0 %vm1001_vm8, %v1816_v62 }
 0x5e5   : > { %1825 = vrot.lane.b32.xlu0 %v1781_v43, %s2495_s16 }
 0x5ea   : > { %v1818_v8 = vpop.permute.xlu0 %1817 }
 0x5eb   : > { %2335 = vmatmul.msk.f32.gmra.mxu0 %vm1001_vm8, %v1818_v8 }
 0x5ec   : > { %v1049_v61 = vpop.xlane.xlu1 %1048 }
 0x5ed   : > { %v1689_v12 = vmul.f32 %v1671_v11, %v1049_v61 }
 0x5ef   : > { %2481 = vrcp.f32 %v1689_v12 }
 0x5f5   : > { %v2482_v35 = vpop.eup %2481 }
 0x5f6   : > { %1752 = vrot.lane.b32.xlu2 %v2482_v35, %s2492_s19 }
 0x5fb   : > { %v1749_v59 = vpop.permute.xlu2 %1748 }
 0x5fc   : > { %v1783_v24 = vmul.f32 %v3307_v19, %v1749_v59 }
 0x5fe   : > { %1829 = vrot.lane.b32.xlu1 %v1783_v24, %s2495_s16 }
 0x603   : > { %v1751_v30 = vpop.permute.xlu2 %1750 }
 0x604   : > { %v1784_v55 = vmul.f32 %v3322_v28, %v1751_v30  ;;  %v1747_v15 = vpop.permute.xlu1 %1746 }
 0x605   : > { %v1782_v52 = vmul.f32 %v3258_v6, %v1747_v15 }
 0x606   : > { %1831 = vrot.lane.b32.xlu0 %v1784_v55, %s2495_s16 }
 0x607   : > { %1827 = vrot.lane.b32.xlu2 %v1782_v52, %s2495_s16 }
 0x615   : > { %v1820_v14 = vpop.permute.xlu0 %1819 }
 0x616   : > { %2336 = vmatmul.msk.f32.gmra.mxu0 %vm1001_vm8, %v1820_v14 }
 0x61d   : > { %v1822_v36 = vpop.permute.xlu0 %1821 }
 0x61e   : > { %2337 = vmatmul.msk.f32.gmra.mxu0 %vm1001_vm8, %v1822_v36 }
 0x626   : > { %v1887_v17 = vpop.f32.mrf.mxu0 }
 0x627   : > { %1951 = vrot.lane.b32.xlu1 %v1887_v17, %s2493_s28 }
 0x62f   : > { %v1824_v19 = vpop.permute.xlu1 %1823 }
 0x630   : > { %2338 = vmatmul.msk.f32.gmra.mxu0 %vm1001_vm8, %v1824_v19 }
 0x637   : > { %v1890_v28 = vpop.f32.mrf.mxu0 }
 0x638   : > { %1953 = vrot.lane.b32.xlu0 %v1890_v28, %s2493_s28 }
 0x63f   : > { %v1893_v6 = vpop.f32.mrf.mxu0 }
 0x647   : > { %v1896_v56 = vpop.f32.mrf.mxu0 }
 0x648   : > { %1957 = vrot.lane.b32.xlu1 %v1896_v56, %s2493_s28 }
 0x64f   : > { %v1899_v25 = vpop.f32.mrf.mxu0 }
 0x650   : > { %1959 = vrot.lane.b32.xlu0 %v1899_v25, %s2493_s28  ;;  %v1753_v58 = vpop.permute.xlu2 %1752 }
 0x651   : > { %v1785_v42 = vmul.f32 %v3317_v39, %v1753_v58 }
 0x653   : > { %1833 = vrot.lane.b32.xlu2 %v1785_v42, %s2495_s16 }
 0x657   : > { %v1826_v23 = vpop.permute.xlu0 %1825 }
 0x658   : > { %v1902_v16 = vpop.f32.mrf.mxu0  ;;  %2339 = vmatmul.msk.f32.gmra.mxu0 %vm1001_vm8, %v1826_v23 }
 0x65b   : > { %1955 = vrot.lane.b32.xlu2 %v1893_v6, %s2493_s28 }
 0x660   : > { %v1905_v34 = vpop.f32.mrf.mxu0 }
 0x661   : > { %1963 = vrot.lane.b32.xlu0 %v1905_v34, %s2493_s28  ;;  %v1828_v13 = vpop.permute.xlu2 %1827 }
 0x662   : > { %2340 = vmatmul.msk.f32.gmra.mxu0 %vm1001_vm8, %v1828_v13 }
 0x663   : > { %1961 = vrot.lane.b32.xlu2 %v1902_v16, %s2493_s28 }
 0x668   : > { %v1908_v2 = vpop.f32.mrf.mxu0 }
 0x670   : > { %v1830_v51 = vpop.permute.xlu1 %1829 }
 0x671   : > { %2341 = vmatmul.msk.f32.gmra.mxu0 %vm1001_vm8, %v1830_v51 }
 0x678   : > { %v1832_v39 = vpop.permute.xlu0 %1831 }
 0x679   : > { %2342 = vmatmul.msk.f32.gmra.mxu0 %vm1001_vm8, %v1832_v39 }
 0x693   : > { %v1911_v32 = vpop.f32.mrf.mxu0 }
 0x699   : > { %v1952_v50 = vpop.permute.xlu1 %1951 }
 0x69a   : > { %v1999_v22 = vmul.f32 %v3187_v48, %v1952_v50 }
 0x69b   : > { %v1914_v18 = vpop.f32.mrf.mxu0 }
 0x69c   : > { %2035 = vrot.lane.b32.xlu1 %v1999_v22, %s2496_s17 }
 0x6a4   : > { %1965 = vrot.lane.b32.xlu1 %v1908_v2, %s2493_s28 }
 0x6aa   : > { %v1954_v46 = vpop.permute.xlu0 %1953 }
 0x6ab   : > { %v2000_v54 = vmul.f32 %v3193_v5, %v1954_v46 }
 0x6ad   : > { %2037 = vrot.lane.b32.xlu2 %v2000_v54, %s2496_s17  ;;  %v1834_v49 = vpop.permute.xlu2 %1833  ;;  %v1917_v41 = vpop.f32.mrf.mxu0 }
 0x6ae   : > { %2343 = vmatmul.msk.f32.gmra.mxu0 %vm1001_vm8, %v1834_v49 }
 0x6b5   : > { %1967 = vrot.lane.b32.xlu2 %v1911_v32, %s2493_s28  ;;  %v1956_v0 = vpop.permute.xlu2 %1955 }
 0x6b6   : > { %v2001_v33 = vmul.f32 %v3246_v3, %v1956_v0 }
 0x6b8   : > { %2039 = vrot.lane.b32.xlu0 %v2001_v33, %s2496_s17 }
 0x6ba   : > { %v1958_v48 = vpop.permute.xlu1 %1957 }
 0x6bb   : > { %v2002_v27 = vmul.f32 %v3268_v53, %v1958_v48 }
 0x6bd   : > { %2041 = vrot.lane.b32.xlu1 %v2002_v27, %s2496_s17  ;;  %v1962_v26 = vpop.permute.xlu2 %1961 }
 0x6be   : > { %v2004_v3 = vmul.f32 %v3274_v38, %v1962_v26  ;;  %v2017_v38 = vld [vmem:[%s3562_s11 + $0x10] sm:$0xff] }
 0x6c0   : > { %1969 = vrot.lane.b32.xlu0 %v1914_v18, %s2493_s28 }
 0x6c2   : > { %v1960_v5 = vpop.permute.xlu0 %1959 }
 0x6c3   : > { %v2003_v21 = vmul.f32 %v3201_v45, %v1960_v5  ;;  %v2018_v45 = vld [vmem:[%s3562_s11 + $0x18] sm:$0xff] }
 0x6c4   : > { %2111 = vmatpush.msrb.mxu2 %v2018_v45 }
 0x6c5   : > { %1971 = vrot.lane.b32.xlu1 %v1917_v41, %s2493_s28  ;;  %2043 = vrot.lane.b32.xlu2 %v2003_v21, %s2496_s17 }
 0x6c6   : > { %2112 = vmatpush.msrb.mxu2 %v2017_v38 }
 0x6c8   : > { %2045 = vrot.lane.b32.xlu0 %v2004_v3, %s2496_s17 }
 0x6d3   : > { %v1964_v1 = vpop.permute.xlu0 %1963 }
 0x6d4   : > { %v2005_v53 = vmul.f32 %v3264_v20, %v1964_v1  ;;  %v2016_v20 = vld [vmem:[%s3562_s11 + $0x8] sm:$0xff] }
 0x6d5   : > { %v1920_v44 = vpop.f32.mrf.mxu0  ;;  %2113 = vmatpush.msrb.mxu2 %v2016_v20 }
 0x6d6   : > { %2047 = vrot.lane.b32.xlu1 %v2005_v53, %s2496_s17  ;;  %1973 = vrot.lane.b32.xlu2 %v1920_v44, %s2493_s28 }
 0x6d7   : > { %2114 = vmatpush.msrb.mxu2 %v2015_v47 }
 0x6df   : > { %v1923_v60 = vpop.f32.mrf.mxu0 }
 0x6e0   : > { %1975 = vrot.lane.b32.xlu0 %v1923_v60, %s2493_s28 }
 0x6ee   : > { %v1926_v62 = vpop.f32.mrf.mxu0 }
 0x6ef   : > { %1977 = vrot.lane.b32.xlu1 %v1926_v62, %s2493_s28 }
 0x6f6   : > { %v1929_v35 = vpop.f32.mrf.mxu0 }
 0x707   : > { %v2038_v10 = vpop.permute.xlu2 %2037 }
 0x70e   : > { %v2036_v43 = vpop.permute.xlu1 %2035 }
 0x70f   : > { %2344 = vmatmul.msk.f32.vlgmr.msrb.gmra.mxu2 %vm1054_vm1, %v2036_v43  ;;  %v1968_v8 = vpop.permute.xlu2 %1967 }
 0x710   : > { %v2007_v11 = vmul.f32 %v3303_v57, %v1968_v8 }
 0x712   : > { %2051 = vrot.lane.b32.xlu0 %v2007_v11, %s2496_s17 }
 0x716   : > { %v1966_v61 = vpop.permute.xlu1 %1965 }
 0x717   : > { %v2006_v12 = vmul.f32 %v3197_v63, %v1966_v61  ;;  %2345 = vmatmul.msk.f32.gmra.mxu2 %vm1054_vm1, %v2038_v10 }
 0x719   : > { %2049 = vrot.lane.b32.xlu2 %v2006_v12, %s2496_s17 }
 0x71f   : > { %v2044_v57 = vpop.permute.xlu2 %2043 }
 0x721   : > { %1979 = vrot.lane.b32.xlu2 %v1929_v35, %s2493_s28 }
 0x72a   : > { %v2040_v59 = vpop.permute.xlu0 %2039 }
 0x72b   : > { %v1932_v24 = vpop.f32.mrf.mxu0  ;;  %2346 = vmatmul.msk.f32.gmra.mxu2 %vm1054_vm1, %v2040_v59 }
 0x72c   : > { %1981 = vrot.lane.b32.xlu0 %v1932_v24, %s2493_s28 }
 0x72f   : > { %v2042_v30 = vpop.permute.xlu1 %2041 }
 0x730   : > { %v1974_v52 = vpop.permute.xlu2 %1973 }
 0x731   : > { %v2010_v36 = vmul.f32 %v3313_v7, %v1974_v52 }
 0x732   : > { %v1970_v55 = vpop.permute.xlu0 %1969 }
 0x733   : > { %v2008_v15 = vmul.f32 %v3252_v9, %v1970_v55  ;;  %2347 = vmatmul.msk.f32.gmra.mxu2 %vm1054_vm1, %v2042_v30 }
 0x735   : > { %2053 = vrot.lane.b32.xlu1 %v2008_v15, %s2496_s17 }
 0x737   : > { %v1972_v63 = vpop.permute.xlu1 %1971 }
 0x738   : > { %v2009_v14 = vmul.f32 %v3286_v29, %v1972_v63 }
 0x73a   : > { %2055 = vrot.lane.b32.xlu2 %v2009_v14, %s2496_s17  ;;  %v2046_v17 = vpop.permute.xlu0 %2045 }
 0x73b   : > { %2348 = vmatmul.msk.f32.gmra.mxu2 %vm1054_vm1, %v2044_v57 }
 0x73d   : > { %2057 = vrot.lane.b32.xlu1 %v2010_v36, %s2496_s17 }
 0x743   : > { %2349 = vmatmul.msk.f32.gmra.mxu2 %vm1054_vm1, %v2046_v17 }
 0x748   : > { %v2048_v9 = vpop.permute.xlu1 %2047 }
 0x74b   : > { %2350 = vmatmul.msk.f32.gmra.mxu2 %vm1054_vm1, %v2048_v9 }
 0x752   : > { %v1976_v19 = vpop.permute.xlu0 %1975 }
 0x753   : > { %v2011_v28 = vmul.f32 %v3295_v40, %v1976_v19 }
 0x755   : > { %2059 = vrot.lane.b32.xlu0 %v2011_v28, %s2496_s17 }
 0x761   : > { %v1978_v29 = vpop.permute.xlu1 %1977 }
 0x762   : > { %v2012_v6 = vmul.f32 %v3328_v31, %v1978_v29 }
 0x764   : > { %2061 = vrot.lane.b32.xlu2 %v2012_v6, %s2496_s17 }
 0x773   : > { %v2050_v7 = vpop.permute.xlu2 %2049 }
 0x774   : > { %2351 = vmatmul.msk.f32.gmra.mxu2 %vm1054_vm1, %v2050_v7 }
 0x77b   : > { %v1980_v56 = vpop.permute.xlu2 %1979 }
 0x77c   : > { %v2013_v25 = vmul.f32 %v3349_v4, %v1980_v56 }
 0x77e   : > { %2063 = vrot.lane.b32.xlu1 %v2013_v25, %s2496_s17 }
 0x784   : > { %v2052_v58 = vpop.permute.xlu0 %2051 }
 0x785   : > { %2352 = vmatmul.msk.f32.gmra.mxu2 %vm1054_vm1, %v2052_v58 }
 0x792   : > { %v2116_v40 = vpop.f32.mrf.mxu2 }
 0x793   : > { %2164 = vst.msk [vmem:[%s3505_s26] sm:$0xff] %vm1001_vm8, %v2116_v40 }
 0x794   : > { %v2056_v34 = vpop.permute.xlu2 %2055 }
 0x79a   : > { %v2119_v31 = vpop.f32.mrf.mxu2 }
 0x79b   : > { %2165 = vst.msk [vmem:[%s3505_s26 + $0x8] sm:$0xff] %vm1001_vm8, %v2119_v31 }
 0x79e   : > { %v1982_v4 = vpop.permute.xlu0 %1981 }
 0x79f   : > { %v2014_v42 = vmul.f32 %v3337_v37, %v1982_v4 }
 0x7a1   : > { %2065 = vrot.lane.b32.xlu0 %v2014_v42, %s2496_s17 }
 0x7a7   : > { %v2054_v23 = vpop.permute.xlu1 %2053 }
 0x7a8   : > { %2353 = vmatmul.msk.f32.gmra.mxu2 %vm1054_vm1, %v2054_v23 }
 0x7ae   : > { %v2122_v16 = vpop.f32.mrf.mxu2 }
 0x7af   : > { %2166 = vst.msk [vmem:[%s3505_s26 + $0x10] sm:$0xff] %vm1001_vm8, %v2122_v16  ;;  %v2058_v51 = vpop.permute.xlu1 %2057 }
 0x7b0   : > { %2354 = vmatmul.msk.f32.gmra.mxu2 %vm1054_vm1, %v2056_v34 }
 0x7b6   : > { %v2125_v13 = vpop.f32.mrf.mxu2 }
 0x7b7   : > { %2167 = vst.msk [vmem:[%s3505_s26 + $0x18] sm:$0xff] %vm1001_vm8, %v2125_v13 }
 0x7b8   : > { %2355 = vmatmul.msk.f32.gmra.mxu2 %vm1054_vm1, %v2058_v51 }
 0x7be   : > { %v2128_v37 = vpop.f32.mrf.mxu2  ;;  %v2062_v2 = vpop.permute.xlu2 %2061 }
 0x7bf   : > { %2168 = vst.msk [vmem:[%s3505_s26 + $0x20] sm:$0xff] %vm1001_vm8, %v2128_v37 }
 0x7c6   : > { %v2131_v39 = vpop.f32.mrf.mxu2 }
 0x7c7   : > { %2169 = vst.msk [vmem:[%s3505_s26 + $0x28] sm:$0xff] %vm1001_vm8, %v2131_v39  ;;  %v2060_v50 = vpop.permute.xlu0 %2059 }
 0x7c8   : > { %2356 = vmatmul.msk.f32.gmra.mxu2 %vm1054_vm1, %v2060_v50 }
 0x7ce   : > { %v2134_v22 = vpop.f32.mrf.mxu2 }
 0x7cf   : > { %2170 = vst.msk [vmem:[%s3505_s26 + $0x30] sm:$0xff] %vm1001_vm8, %v2134_v22 }
 0x7d0   : > { %2357 = vmatmul.msk.f32.gmra.mxu2 %vm1054_vm1, %v2062_v2 }
 0x7f0   : > { %v2064_v46 = vpop.permute.xlu1 %2063 }
 0x7f1   : > { %2358 = vmatmul.msk.f32.gmra.mxu2 %vm1054_vm1, %v2064_v46 }
 0x7f7   : > { %v2137_v54 = vpop.f32.mrf.mxu2 }
 0x7f8   : > { %2171 = vst.msk [vmem:[%s3505_s26 + $0x38] sm:$0xff] %vm1001_vm8, %v2137_v54 }
 0x808   : > { %v2140_v49 = vpop.f32.mrf.mxu2 }
 0x809   : > { %2172 = vst.msk [vmem:[%s3505_s26 + $0x40] sm:$0xff] %vm1001_vm8, %v2140_v49 }
 0x813   : > { %v2066_v32 = vpop.permute.xlu0 %2065 }
 0x814   : > { %2359 = vmatmul.msk.f32.gmra.mxu2 %vm1054_vm1, %v2066_v32 }
 0x82b   : > { %v2143_v0 = vpop.f32.mrf.mxu2 }
 0x82c   : > { %2173 = vst.msk [vmem:[%s3505_s26 + $0x48] sm:$0xff] %vm1001_vm8, %v2143_v0 }
 0x833   : > { %v2146_v33 = vpop.f32.mrf.mxu2 }
 0x834   : > { %2174 = vst.msk [vmem:[%s3505_s26 + $0x50] sm:$0xff] %vm1001_vm8, %v2146_v33 }
 0x83b   : > { %v2149_v48 = vpop.f32.mrf.mxu2 }
 0x83c   : > { %2175 = vst.msk [vmem:[%s3505_s26 + $0x58] sm:$0xff] %vm1001_vm8, %v2149_v48 }
 0x84b   : > { %v2152_v27 = vpop.f32.mrf.mxu2 }
 0x84c   : > { %2176 = vst.msk [vmem:[%s3505_s26 + $0x60] sm:$0xff] %vm1001_vm8, %v2152_v27 }
 0x853   : > { %v2155_v18 = vpop.f32.mrf.mxu2 }
 0x854   : > { %2177 = vst.msk [vmem:[%s3505_s26 + $0x68] sm:$0xff] %vm1001_vm8, %v2155_v18 }
 0x874   : > { %v2158_v5 = vpop.f32.mrf.mxu2 }
 0x875   : > { %2178 = vst.msk [vmem:[%s3505_s26 + $0x70] sm:$0xff] %vm1001_vm8, %v2158_v5 }
 0x897   : > { %v2161_v26 = vpop.f32.mrf.mxu2 }
 0x898   : > { %2179 = vst.msk [vmem:[%s3505_s26 + $0x78] sm:$0xff] %vm1001_vm8, %v2161_v26 }
 0x899 PF: > { %s22_s21 = sadd.s32 1, %s2489_s21  }
 0x89a   : > { %p19_p4 = scmp.ge.s32.totalorder %s22_s21, 4  }
 0x89c   :  { %21 = sbr.rel (!%p19_p4) target bundleno = 1 (0x1), region = 98 }

</bundles_post_ra>
